<compile_context>
chip_gen: v7x
topology: tpu7x:2x2x1
jax: 0.10.0
libtpu: 0.0.40
codegen_flags: <defaults>
</compile_context>

<pallas_src>
import functools

import jax
import jax.numpy as jnp
from jax.experimental import pallas as pl
from jax.experimental.pallas import tpu as pltpu


# ------------------------------- Pallas kernel ------------------------------ #

def _attention_kernel(alpha_ref, x_ref, wq_ref, bq_ref, wk_ref, bk_ref,
                      wv_ref, bv_ref, o_ref, *, tq):
    """One (batch, query-tile) grid step: fully fused self-attention."""
    qi = pl.program_id(1)

    x = x_ref[0]                                   # (WH, C)   full spatial rows
    q_start = pl.multiple_of(qi * tq, tq)
    xq = x_ref[0, pl.ds(q_start, tq), :]           # (TQ, C)   this query tile

    # 1x1-conv projections as small matmuls (MXU, f32 accumulate).
    q = jnp.dot(xq, wq_ref[...], preferred_element_type=jnp.float32) + bq_ref[...]
    k = jnp.dot(x, wk_ref[...], preferred_element_type=jnp.float32) + bk_ref[...]
    v = jnp.dot(x, wv_ref[...], preferred_element_type=jnp.float32) + bv_ref[...]

    # energy (TQ, WH): contraction over the small head dim, WH stays on lanes.
    energy = jnp.einsum("qd,kd->qk", q, k, preferred_element_type=jnp.float32)

    # Row-wise softmax over the key axis.
    m = jnp.max(energy, axis=-1, keepdims=True)
    p = jnp.exp(energy - m)
    attn = p / jnp.sum(p, axis=-1, keepdims=True)

    out = jnp.dot(attn, v, preferred_element_type=jnp.float32)   # (TQ, C)

    alpha = alpha_ref[0]                                          # SMEM scalar
    o_ref[0] = alpha * out + xq


# ----------------------------- pallas_call wrapper --------------------------- #

def _pick_tq(wh):
    """Query-tile size: bounded, sublane-aligned, divides WH."""
    for t in (1024, 512, 256, 128):
        if wh % t == 0:
            return t
    return wh


def self_attention(x_nchw, params):
    """Forward pass of SelfAttention.  Input NCHW, output NCHW."""
    b, c, w, h = x_nchw.shape
    wh = w * h
    c8 = params["wq"].shape[0]

    # NCHW -> (B, WH, C); pixel ordering matches PyTorch's view(B, C, W*H).
    x = jnp.transpose(x_nchw, (0, 2, 3, 1)).reshape(b, wh, c).astype(jnp.float32)

    # PyTorch Conv2d 1x1 weight (Cout, Cin, 1, 1) -> (Cin, Cout) matmul form.
    def wmat(wt):
        return jnp.transpose(wt[:, :, 0, 0], (1, 0)).astype(jnp.float32)

    wq, wk, wv = wmat(params["wq"]), wmat(params["wk"]), wmat(params["wv"])
    bq = params["bq"].reshape(1, c8).astype(jnp.float32)
    bk = params["bk"].reshape(1, c8).astype(jnp.float32)
    bv = params["bv"].reshape(1, c).astype(jnp.float32)
    alpha = params["alpha"].reshape(1).astype(jnp.float32)

    tq = _pick_tq(wh)
    nq = wh // tq

    out = pl.pallas_call(
        functools.partial(_attention_kernel, tq=tq),
        out_shape=jax.ShapeDtypeStruct((b, wh, c), jnp.float32),
        grid=(b, nq),
        in_specs=[
            pl.BlockSpec(memory_space=pltpu.MemorySpace.SMEM),       # alpha (scalar)
            pl.BlockSpec((1, wh, c), lambda bi, qi: (bi, 0, 0)),     # x (full rows)
            pl.BlockSpec((c, c8), lambda bi, qi: (0, 0)),            # Wq
            pl.BlockSpec((1, c8), lambda bi, qi: (0, 0)),            # bq
            pl.BlockSpec((c, c8), lambda bi, qi: (0, 0)),            # Wk
            pl.BlockSpec((1, c8), lambda bi, qi: (0, 0)),            # bk
            pl.BlockSpec((c, c), lambda bi, qi: (0, 0)),             # Wv
            pl.BlockSpec((1, c), lambda bi, qi: (0, 0)),             # bv
        ],
        out_specs=pl.BlockSpec((1, tq, c), lambda bi, qi: (bi, qi, 0)),
        compiler_params=pltpu.CompilerParams(
            dimension_semantics=("parallel", "parallel")),
    )(alpha, x, wq, bq, wk, bk, wv, bv)

    out = out.reshape(b, w, h, c)
    return jnp.transpose(out, (0, 3, 1, 2))


# ----------------------------- pure-JAX reference ---------------------------- #

def self_attention_reference(x_nchw, params):
    hp = jax.lax.Precision.HIGHEST
    b, c, w, h = x_nchw.shape
    wh = w * h
    xf = x_nchw.reshape(b, c, wh).astype(jnp.float32)            # (B, C, WH)
    wq2, wk2, wv2 = (params[k][:, :, 0, 0] for k in ("wq", "wk", "wv"))
    xq = jnp.einsum("oc,bcn->bno", wq2, xf, precision=hp) + params["bq"][None, None, :]
    xk = jnp.einsum("oc,bcn->bon", wk2, xf, precision=hp) + params["bk"][None, :, None]
    xv = jnp.einsum("oc,bcn->bon", wv2, xf, precision=hp) + params["bv"][None, :, None]
    energy = jnp.einsum("bno,bom->bnm", xq, xk, precision=hp)
    attn = jax.nn.softmax(energy, axis=-1)
    out = jnp.einsum("bcm,bnm->bcn", xv, attn, precision=hp)
    out = out.reshape(b, c, w, h)
    return params["alpha"] * out + x_nchw


# ------------------------------- parameter init ------------------------------ #

def init_params(key, hid_channels, alpha=0.75):
    c8 = hid_channels // 8
    ks = iter(jax.random.split(key, 8))

    def nrm(shape, s=0.2):
        return s * jax.random.normal(next(ks), shape, jnp.float32)

    return {
        "wq": nrm((c8, hid_channels, 1, 1)),       # PyTorch Conv2d weight layout
        "bq": nrm((c8,)),
        "wk": nrm((c8, hid_channels, 1, 1)),
        "bk": nrm((c8,)),
        "wv": nrm((hid_channels, hid_channels, 1, 1)),
        "bv": nrm((hid_channels,)),
        "alpha": jnp.asarray(alpha, jnp.float32),  # nonzero so the attn path is exercised
    }


# ------------------------------------ main ----------------------------------- #

if __name__ == "__main__":
    key = jax.random.PRNGKey(0)
    k_param, k_x = jax.random.split(key)

    hid_channels = 32
    N, W, H = 2, 16, 16

    params = init_params(k_param, hid_channels, alpha=0.75)
    x = jax.random.normal(k_x, (N, hid_channels, W, H), jnp.float32)

    fwd = jax.jit(self_attention)
    out = jax.block_until_ready(fwd(x, params))

    assert out.shape == (N, hid_channels, W, H), out.shape
    assert jnp.all(jnp.isfinite(out))

    ref = self_attention_reference(x, params)
    max_err = float(jnp.max(jnp.abs(out - ref)))
    assert max_err < 5e-3, f"mismatch vs reference: {max_err}"

    print("KERNEL_OK")
</pallas_src>

<mosaic_0001>
module attributes {stable_mosaic.version = 11 : i64} {
  func.func @_attention_kernel(%arg0: i32, %arg1: i32, %arg2: memref<1xf32, #tpu.memory_space<smem>>, %arg3: memref<1x256x32xf32, #tpu.memory_space<vmem>>, %arg4: memref<32x4xf32, #tpu.memory_space<vmem>>, %arg5: memref<1x4xf32, #tpu.memory_space<vmem>>, %arg6: memref<32x4xf32, #tpu.memory_space<vmem>>, %arg7: memref<1x4xf32, #tpu.memory_space<vmem>>, %arg8: memref<32x32xf32, #tpu.memory_space<vmem>>, %arg9: memref<1x32xf32, #tpu.memory_space<vmem>>, %arg10: memref<1x256x32xf32, #tpu.memory_space<vmem>>) attributes {dimension_semantics = [#tpu.dimension_semantics<parallel>, #tpu.dimension_semantics<parallel>], iteration_bounds = array<i64: 2, 1>, scalar_prefetch = 0 : i64, scratch_operands = 0 : i64, tpu.core_type = #tpu.core_type<tc>, window_params = [{transform_indices = @transform_0, window_bounds = array<i64: 1>}, {transform_indices = @transform_1, window_bounds = array<i64: 1, 256, 32>}, {pipeline_mode = #tpu.pipeline_mode<synchronous>, transform_indices = @transform_2, window_bounds = array<i64: 32, 4>}, {pipeline_mode = #tpu.pipeline_mode<synchronous>, transform_indices = @transform_3, window_bounds = array<i64: 1, 4>}, {pipeline_mode = #tpu.pipeline_mode<synchronous>, transform_indices = @transform_4, window_bounds = array<i64: 32, 4>}, {pipeline_mode = #tpu.pipeline_mode<synchronous>, transform_indices = @transform_5, window_bounds = array<i64: 1, 4>}, {pipeline_mode = #tpu.pipeline_mode<synchronous>, transform_indices = @transform_6, window_bounds = array<i64: 32, 32>}, {pipeline_mode = #tpu.pipeline_mode<synchronous>, transform_indices = @transform_7, window_bounds = array<i64: 1, 32>}, {transform_indices = @transform_8, window_bounds = array<i64: 1, 256, 32>}]} {
    %c0 = arith.constant 0 : index
    %c0_0 = arith.constant 0 : index
    %c0_1 = arith.constant 0 : index
    %0 = vector.load %arg3[%c0, %c0_0, %c0_1] : memref<1x256x32xf32, #tpu.memory_space<vmem>>, vector<1x256x32xf32>
    %1 = vector.shape_cast %0 : vector<1x256x32xf32> to vector<256x32xf32>
    %c256_i32 = arith.constant 256 : i32
    %2 = arith.muli %arg1, %c256_i32 : i32
    %3 = tpu.assume_multiple %2, 256 : i32
    %c0_2 = arith.constant 0 : index
    %4 = arith.index_cast %3 : i32 to index
    %c0_3 = arith.constant 0 : index
    %5 = vector.load %arg3[%c0_2, %4, %c0_3] : memref<1x256x32xf32, #tpu.memory_space<vmem>>, vector<1x256x32xf32>
    %6 = vector.shape_cast %5 : vector<1x256x32xf32> to vector<256x32xf32>
    %c0_4 = arith.constant 0 : index
    %c0_5 = arith.constant 0 : index
    %7 = vector.load %arg4[%c0_4, %c0_5] : memref<32x4xf32, #tpu.memory_space<vmem>>, vector<32x4xf32>
    %cst = arith.constant dense<0.000000e+00> : vector<256x4xf32>
    %8 = tpu.matmul %6, %7, %cst {dimension_numbers = #tpu.dot_dimension_numbers<[1], [0], [0], [1], [0, 0, 1, 1], [], []>} : vector<256x32xf32>, vector<32x4xf32>, vector<256x4xf32> -> vector<256x4xf32>
    %c0_6 = arith.constant 0 : index
    %c0_7 = arith.constant 0 : index
    %9 = vector.load %arg5[%c0_6, %c0_7] : memref<1x4xf32, #tpu.memory_space<vmem>>, vector<1x4xf32>
    %10 = vector.broadcast %9 : vector<1x4xf32> to vector<256x4xf32>
    %11 = arith.addf %8, %10 : vector<256x4xf32>
    %c0_8 = arith.constant 0 : index
    %c0_9 = arith.constant 0 : index
    %12 = vector.load %arg6[%c0_8, %c0_9] : memref<32x4xf32, #tpu.memory_space<vmem>>, vector<32x4xf32>
    %cst_10 = arith.constant dense<0.000000e+00> : vector<256x4xf32>
    %13 = tpu.matmul %1, %12, %cst_10 {dimension_numbers = #tpu.dot_dimension_numbers<[1], [0], [0], [1], [0, 0, 1, 1], [], []>} : vector<256x32xf32>, vector<32x4xf32>, vector<256x4xf32> -> vector<256x4xf32>
    %c0_11 = arith.constant 0 : index
    %c0_12 = arith.constant 0 : index
    %14 = vector.load %arg7[%c0_11, %c0_12] : memref<1x4xf32, #tpu.memory_space<vmem>>, vector<1x4xf32>
    %15 = vector.broadcast %14 : vector<1x4xf32> to vector<256x4xf32>
    %16 = arith.addf %13, %15 : vector<256x4xf32>
    %c0_13 = arith.constant 0 : index
    %c0_14 = arith.constant 0 : index
    %17 = vector.load %arg8[%c0_13, %c0_14] : memref<32x32xf32, #tpu.memory_space<vmem>>, vector<32x32xf32>
    %cst_15 = arith.constant dense<0.000000e+00> : vector<256x32xf32>
    %18 = tpu.matmul %1, %17, %cst_15 {dimension_numbers = #tpu.dot_dimension_numbers<[1], [0], [0], [1], [0, 0, 1, 1], [], []>} : vector<256x32xf32>, vector<32x32xf32>, vector<256x32xf32> -> vector<256x32xf32>
    %c0_16 = arith.constant 0 : index
    %c0_17 = arith.constant 0 : index
    %19 = vector.load %arg9[%c0_16, %c0_17] : memref<1x32xf32, #tpu.memory_space<vmem>>, vector<1x32xf32>
    %20 = vector.broadcast %19 : vector<1x32xf32> to vector<256x32xf32>
    %21 = arith.addf %18, %20 : vector<256x32xf32>
    "tpu.trace_start"() <{level = 10 : i32, message = "qd,kd->qk"}> : () -> ()
    %cst_18 = arith.constant dense<0.000000e+00> : vector<256x256xf32>
    %22 = tpu.matmul %11, %16, %cst_18 {dimension_numbers = #tpu.dot_dimension_numbers<[1], [1], [0], [0], [0, 0, 1, 0], [], []>} : vector<256x4xf32>, vector<256x4xf32>, vector<256x256xf32> -> vector<256x256xf32>
    "tpu.trace_stop"() : () -> ()
    %cst_19 = arith.constant dense<0xFF800000> : vector<256xf32>
    %23 = vector.multi_reduction <maximumf>, %22, %cst_19 [1] : vector<256x256xf32> to vector<256xf32>
    %24 = vector.shape_cast %23 : vector<256xf32> to vector<256x1xf32>
    %25 = vector.broadcast %24 : vector<256x1xf32> to vector<256x256xf32>
    %26 = arith.subf %22, %25 : vector<256x256xf32>
    %27 = math.exp %26 : vector<256x256xf32>
    %cst_20 = arith.constant dense<0.000000e+00> : vector<256xf32>
    %28 = vector.multi_reduction <add>, %27, %cst_20 [1] : vector<256x256xf32> to vector<256xf32>
    %29 = vector.shape_cast %28 : vector<256xf32> to vector<256x1xf32>
    %30 = vector.broadcast %29 : vector<256x1xf32> to vector<256x256xf32>
    %31 = arith.divf %27, %30 : vector<256x256xf32>
    %cst_21 = arith.constant dense<0.000000e+00> : vector<256x32xf32>
    %32 = tpu.matmul %31, %21, %cst_21 {dimension_numbers = #tpu.dot_dimension_numbers<[1], [0], [0], [1], [0, 0, 1, 1], [], []>} : vector<256x256xf32>, vector<256x32xf32>, vector<256x32xf32> -> vector<256x32xf32>
    %c0_22 = arith.constant 0 : index
    %33 = memref.load %arg2[%c0_22] : memref<1xf32, #tpu.memory_space<smem>>
    %34 = vector.broadcast %33 : f32 to vector<256x32xf32>
    %35 = arith.mulf %34, %32 : vector<256x32xf32>
    %36 = arith.addf %35, %6 : vector<256x32xf32>
    %c0_23 = arith.constant 0 : index
    %c0_24 = arith.constant 0 : index
    %c0_25 = arith.constant 0 : index
    %37 = vector.load %arg10[%c0_23, %c0_24, %c0_25] : memref<1x256x32xf32, #tpu.memory_space<vmem>>, vector<1x256x32xf32>
    %38 = vector.shape_cast %37 : vector<1x256x32xf32> to vector<256x32xf32>
    %39 = vector.shape_cast %36 : vector<256x32xf32> to vector<1x256x32xf32>
    tpu.vector_store %arg10[%c0_23, %c0_24, %c0_25], %39 {strides = array<i32>} : memref<1x256x32xf32, #tpu.memory_space<vmem>>, vector<1x256x32xf32>,
    return
  }
  func.func @transform_0(%arg0: i32, %arg1: i32) -> i32 {
    %c0_i32 = arith.constant 0 : i32
    %c0_i32_0 = arith.constant 0 : i32
    return %c0_i32 : i32
  }
  func.func @transform_1(%arg0: i32, %arg1: i32) -> (i32, i32, i32) {
    %c0_i32 = arith.constant 0 : i32
    %c0_i32_0 = arith.constant 0 : i32
    %c0_i32_1 = arith.constant 0 : i32
    return %arg0, %c0_i32, %c0_i32_0 : i32, i32, i32
  }
  func.func @transform_2(%arg0: i32, %arg1: i32) -> (i32, i32) {
    %c0_i32 = arith.constant 0 : i32
    %c0_i32_0 = arith.constant 0 : i32
    %c0_i32_1 = arith.constant 0 : i32
    return %c0_i32, %c0_i32_0 : i32, i32
  }
  func.func @transform_3(%arg0: i32, %arg1: i32) -> (i32, i32) {
    %c0_i32 = arith.constant 0 : i32
    %c0_i32_0 = arith.constant 0 : i32
    %c0_i32_1 = arith.constant 0 : i32
    return %c0_i32, %c0_i32_0 : i32, i32
  }
  func.func @transform_4(%arg0: i32, %arg1: i32) -> (i32, i32) {
    %c0_i32 = arith.constant 0 : i32
    %c0_i32_0 = arith.constant 0 : i32
    %c0_i32_1 = arith.constant 0 : i32
    return %c0_i32, %c0_i32_0 : i32, i32
  }
  func.func @transform_5(%arg0: i32, %arg1: i32) -> (i32, i32) {
    %c0_i32 = arith.constant 0 : i32
    %c0_i32_0 = arith.constant 0 : i32
    %c0_i32_1 = arith.constant 0 : i32
    return %c0_i32, %c0_i32_0 : i32, i32
  }
  func.func @transform_6(%arg0: i32, %arg1: i32) -> (i32, i32) {
    %c0_i32 = arith.constant 0 : i32
    %c0_i32_0 = arith.constant 0 : i32
    %c0_i32_1 = arith.constant 0 : i32
    return %c0_i32, %c0_i32_0 : i32, i32
  }
  func.func @transform_7(%arg0: i32, %arg1: i32) -> (i32, i32) {
    %c0_i32 = arith.constant 0 : i32
    %c0_i32_0 = arith.constant 0 : i32
    %c0_i32_1 = arith.constant 0 : i32
    return %c0_i32, %c0_i32_0 : i32, i32
  }
  func.func @transform_8(%arg0: i32, %arg1: i32) -> (i32, i32, i32) {
    %c0_i32 = arith.constant 0 : i32
    %c0_i32_0 = arith.constant 0 : i32
    return %arg0, %arg1, %c0_i32 : i32, i32, i32
  }
}

</mosaic_0001>

<bundles_post_ra>
// kernel: self_attention.1
= control target key start
LH: loop header
LB: loop body
LE: loop exit
PB: predicated region body
PF: predicated region fallthrough
CT: control target
= control target key end

     0   :  { %s5356_s0 = inlined_call_operand.<no memory space> [shape: f32[1], index: 0, kind: input, shape index: {}]   ;;  %s5357_s1 = inlined_call_operand.hbm [shape: f32[2,256,32], index: 1, kind: input, shape index: {}]   ;;  %s5358_s2 = inlined_call_operand.vmem [shape: f32[32,4], index: 2, kind: input, shape index: {}]   ;;  %s5359_s3 = inlined_call_operand.vmem [shape: f32[1,4], index: 3, kind: input, shape index: {}]   ;;  %s5360_s4 = inlined_call_operand.vmem [shape: f32[32,4], index: 4, kind: input, shape index: {}]   ;;  %s5361_s5 = inlined_call_operand.vmem [shape: f32[1,4], index: 5, kind: input, shape index: {}]   ;;  %s5362_s6 = inlined_call_operand.vmem [shape: f32[32,32], index: 6, kind: input, shape index: {}]   ;;  %s5363_s7 = inlined_call_operand.vmem [shape: f32[1,32], index: 7, kind: input, shape index: {}]   ;;  %s5364_s8 = inlined_call_operand.hbm [shape: f32[2,256,32], index: 8, kind: output, shape index: {}]  }
   0x1   :  { %13 = sst [smem:[#allocation2]] %s5356_s0 }
   0x2   :  { %14 = vsyncpa [#allocation4], 0 }
   0x3   :  { %16 = vsyncpa [#allocation4 + $0x1], 0 }
   0x4   :  { %17 = vsyncpa [#allocation5], 0 }
   0x5   :  { %19 = vsyncpa [#allocation5 + $0x1], 0  ;;  %s3798_s29 = smov 0   ;;  %s3800_s30 = smov 0  }
   0x6   :  { %s3802_s9 = smov 0   ;;  %s3804_s10 = smov 0  }
   0x7   :  { %s3806_s11 = smov 0   ;;  %s3808_s12 = smov 0  }
   0x8 LB: > { %s2662_s0 = sadd.s32 4294967295, %s3741_s12   ;;  %s2663_s13 = sadd.s32 4294967294, %s3741_s12   ;;  %s3741_s12 = sphi %s3808_s12, %s25_s12   ;;  %s3737_s11 = sphi %s3806_s11, %s5551_s11   ;;  %s3733_s10 = sphi %s3804_s10, %s5550_s10   ;;  %s3729_s9 = sphi %s3802_s9, %s5549_s9   ;;  %s3725_s30 = sphi %s3800_s30, %s5548_s30   ;;  %s3721_s29 = sphi %s3798_s29, %s5547_s29  }
   0x9   : > { %s37_s14 = sadd.s32 1, %s3737_s11  ;;  %s65_s15 = sadd.s32 1, %s3729_s9 }
   0xa   : > { %p39_p0 = scmp.ge.s32.totalorder %s37_s14, 2  ;;  %p72_p1 = scmp.ne.s32.totalorder %s3729_s9, %s3725_s30 }
   0xb   : > { %p73_p2 = scmp.eq.s32.totalorder %s3741_s12, 0  ;;  %p78_p3 = scmp.ne.s32.totalorder %s3725_s30, %s3721_s29 }
   0xc   : > { %s5553_s14 = smov (%p39_p0, %s37_s14), 0  ;;  %p79_p5 = scmp.eq.s32.totalorder %s2662_s0, 0 }
   0xd   : > { %p3839_p4 = por %p73_p2, %p72_p1  ;;  %s62_s17 = ssub.s32 %s3737_s11, %s5553_s14 }
   0xe   : > { %p230_p6 = scmp.eq.s32.totalorder %s2662_s0, 1  ;;  %p63_p7 = scmp.eq.s32.totalorder %s62_s17, 0 }
   0xf   : > { %p3845_p8 = por %p79_p5, %p78_p3  ;;  %p236_p10 = scmp.eq.s32.totalorder %s2663_s13, 1 }
  0x10   : > { %p3849_p9 = por %p230_p6, %p72_p1  ;;  %p3350_p13 = scmp.lt.s32.totalorder %s3741_s12, 2 }
  0x11   : > { %s3854_s20 = scalar_select %p63_p7, %s3729_s9, %s65_s15  }
  0x12   : > { %s5423_s19 = scalar_select %p3849_p9, 1, 0 }
  0x13   : > { %p3856_p11 = por %p236_p10, %p78_p3  ;;  %s277_s22 = sand.u32 1, %s3729_s9  }
  0x14   : > { %s2666_s23 = sshll.u32 %s277_s22, 8  ;;  %s2840_s24 = sshll.u32 %s3737_s11, 12 }
  0x15   : > { %s5424_s21 = scalar_select %p3856_p11, 1, 0 }
  0x16   : > { %s3867_s27 = scalar_lea.hbm %s5357_s1, %s2840_s24  ;;  %s281_s28 = scalar_lea.vmem [#allocation3], %s2666_s23 }
  0x17   : > { %s288_s0 = sshll.u32 %s281_s28, 4  ;;  %p3873_p0 = pnand %p3350_p13, %p3839_p4  ;;  %s3869_s0 = int_to_ptr.vmem [resolvable:$true] %s288_s0 }
  0x18   : > { %s3878_s15 = scalar_lea.sflag [#allocation4], %s277_s22  ;;  %s3629_s17 = scalar_lea.hbm %s3867_s27, 4096 }
  0x19   : > { %p3630_p2 = scmp.ne.s32.totalorder %s3867_s27, %s3629_s17  ;;  %p3631_p3 = pneg %p3873_p0 }
  0x1a   : > { %s3634_s16 = scalar_lea.hbm %s5357_s1, 8192  ;;  %p3635_p4 = scmp.lt.u32.totalorder %s3867_s27, %s5357_s1 }
  0x1b   : > { %p3632_p5 = pnand %p3631_p3, %p3630_p2  ;;  %p3636_p7 = scmp.lt.u32.totalorder %s3634_s16, %s3629_s17 }
  0x1c   : > { %p3638_p13 = scmp.lt.u32.totalorder %s3629_s17, %s3867_s27 }
  0x1d   : > { %p3633_p6 = pneg %p3632_p5  ;;  %p3637_p10 = por %p3636_p7, %p3635_p4 }
  0x1f   : > { %p3639_p12 = por %p3638_p13, %p3637_p10 }
  0x21   : > { %p3640_p1 = pnand %p3639_p12, %p3633_p6 }
  0x23   : > { %3643 = shalt.err (!%p3640_p1)
}
  0x24   : > { %s3644_s22 = scalar_lea.vmem %s3869_s0, 4096  ;;  %s3743_s28 = smov [#allocation3]  }
  0x25   : > { %p3645_p2 = scmp.ne.s32.totalorder %s3869_s0, %s3644_s22  ;;  %s3649_s23 = sshll.u32 %s3743_s28, 4  ;;  %s3650_s23 = int_to_ptr.vmem [resolvable:$false] %s3649_s23 }
  0x26   : > { %s3651_s24 = scalar_lea.vmem %s3650_s23, 8192  ;;  %p3652_p9 = scmp.lt.s32.totalorder %s3869_s0, %s3650_s23 }
  0x27   : > { %p3647_p5 = pnand %p3645_p2, %p3631_p3  ;;  %p3653_p4 = scmp.lt.s32.totalorder %s3651_s24, %s3644_s22 }
  0x29   : > { %p3648_p11 = pneg %p3647_p5  ;;  %p3654_p7 = por %p3653_p4, %p3652_p9 }
  0x2b   : > { %p3655_p10 = pnand %p3654_p7, %p3648_p11 }
  0x2d   : > { %3658 = shalt.err (!%p3655_p10)
}
  0x2e   : > { %s3744_s17 = smov 128   ;;  %s3745_s16 = smov 8  }
  0x2f   : > { %3345 = dma.hbm_to_vmem [thread:$0]  (!%p3873_p0), %s3867_s27, 4096, %s3869_s0, %s3878_s15, %s3744_s17, %s3744_s17, %s3745_s16  }
  0x30   : > { %p296_p12 = scmp.lt.s32.totalorder %s3741_s12, 3  ;;  %p5426_p1 = scmp.ge.s32.totalorder %s3741_s12, 1 }
  0x32   : > { %p297_p3 = pnand %p5426_p1, %p296_p12 }
  0x34   : > { %300 = sbr.rel (%p297_p3) target bundleno = 1305 (0x519), region = 52 }
  0x3b   : > { %s3910_s25 = sand.u32 1, %s3725_s30  }
  0x3c   : > { %s2670_s26 = sshll.u32 %s3910_s25, 8  ;;  %s303_s22 = scalar_lea.sflag [#allocation4], %s3910_s25 }
  0x3d   : > { %s3916_s28 = scalar_lea.vmem [#allocation3], %s2670_s26 }
  0x3e   : > { %3712 = dma.done.wait (%p3845_p8), %s303_s22, 4096  }
  0x3f   : > { %3714 = vsyncadd (%p3845_p8), %s303_s22, 4294963200  ;;  %vm417_vm0 = vcmask 261120   ;;  %v406_v0 = vld [vmem:[%s5358_s2] sm:$0xff]  ;;  %v407_v1 = vld [vmem:[%s5358_s2 + $0x8] sm:$0xff]  ;;  %vm1307_vm1 = vcmask 31744   ;;  %s2462_s27 = sld [smem:[#allocation2]] }
  0x40   : > { %v408_v2 = vld [vmem:[%s5358_s2 + $0x10] sm:$0xff]  ;;  %v3214_v3 = vpack.c.bf16 %v407_v1, %v406_v0  ;;  %v409_v4 = vld [vmem:[%s5358_s2 + $0x18] sm:$0xff]  ;;  %v3935_v5 = vld [vmem:[%s3916_s28 + $0x80] sm:$0xff]  ;;  %s5172_s0 = scalar_lea.vmem [#allocation6], %s2670_s26  ;;  %s2841_s26 = sshll.u32 %s3733_s10, 12 }
  0x41   : > { %5427 = vst [vmem:[#allocation9_spill] sm:$0xff] %v3935_v5  ;;  %v3218_v6 = vpack.c.bf16 %v409_v4, %v408_v2  ;;  %3078 = vmatprep.mubr.msk.f32.mxu1 %vm417_vm0, %v3935_v5  ;;  %v739_v7 = vld [vmem:[%s5360_s4] sm:$0xff]  ;;  %v740_v8 = vld [vmem:[%s5360_s4 + $0x8] sm:$0xff]  ;;  %v741_v10 = vld [vmem:[%s5360_s4 + $0x10] sm:$0xff]  ;;  %s2576_s13 = sshll.u32 %s5172_s0, 4  ;;  %s5302_s24 = scalar_lea.hbm %s5364_s8, %s2841_s26  ;;  %s5304_s13 = int_to_ptr.vmem [resolvable:$true] %s2576_s13 }
  0x42   : > { %3334 = vmatprep.subr.bf16.mxu1 %v3214_v3  ;;  %3215 = vmatprep.subr.bf16.mxu0 %v3214_v3  ;;  %v3222_v9 = vpack.c.bf16 %v740_v8, %v739_v7  ;;  %v742_v11 = vld [vmem:[%s5360_s4 + $0x18] sm:$0xff]  ;;  %v3952_v12 = vld [vmem:[%s3916_s28 + $0x88] sm:$0xff]  ;;  %v3955_v13 = vld [vmem:[%s3916_s28] sm:$0xff]  ;;  %s2561_s10 = scalar_lea.sflag [#allocation5], %s3910_s25  ;;  %s3659_s17 = scalar_lea.vmem %s5304_s13, 4096 }
  0x43   : > { %3336 = vmatpush3.bf16.msra.mxu1 %v3214_v3  ;;  %3217 = vmatpush3.bf16.msra.mxu0 %v3214_v3  ;;  %5428 = vst [vmem:[#allocation10_spill] sm:$0xff] %v3952_v12  ;;  %v3958_v14 = vld [vmem:[%s3916_s28 + $0x90] sm:$0xff]  ;;  %v3226_v15 = vpack.c.bf16 %v742_v11, %v741_v10  ;;  %v3963_v16 = vld [vmem:[%s3916_s28 + $0x8] sm:$0xff]  ;;  %v3972_v17 = vld [vmem:[%s3916_s28 + $0x98] sm:$0xff]  ;;  %p3660_p8 = scmp.ne.s32.totalorder %s5304_s13, %s3659_s17  ;;  %p5544_p9 = scmp.ne.s32.totalorder %s5423_s19, 0 }
  0x44   : > { %3335 = vmatprep.subr.bf16.mxu1 %v3218_v6  ;;  %3219 = vmatprep.subr.bf16.mxu0 %v3218_v6  ;;  %5429 = vst [vmem:[#allocation11_spill] sm:$0xff] %v3958_v14  ;;  %5430 = vst [vmem:[#allocation12_spill] sm:$0xff] %v3972_v17  ;;  %v3975_v18 = vld [vmem:[%s3916_s28 + $0x10] sm:$0xff]  ;;  %v3978_v19 = vld [vmem:[%s3916_s28 + $0xa0] sm:$0xff]  ;;  %s3747_s16 = smov [#allocation6]  }
  0x45   : > { %3054 = vmatprep.mubr.msk.f32.mxu0 %vm417_vm0, %v3955_v13  ;;  %5431 = vst [vmem:[#allocation13_spill] sm:$0xff] %v3978_v19  ;;  %v3983_v20 = vld [vmem:[%s3916_s28 + $0x18] sm:$0xff]  ;;  %v3992_v21 = vld [vmem:[%s3916_s28 + $0xa8] sm:$0xff]  ;;  %v3995_v22 = vld [vmem:[%s3916_s28 + $0x20] sm:$0xff]  ;;  %p3661_p11 = pnand %p3660_p8, %p5544_p9  ;;  %s3663_s18 = sshll.u32 %s3747_s16, 4  ;;  %s3664_s18 = int_to_ptr.vmem [resolvable:$false] %s3663_s18 }
  0x46   : > { %5432 = vst [vmem:[#allocation14_spill] sm:$0xff] %v3992_v21  ;;  %v3998_v23 = vld [vmem:[%s3916_s28 + $0xb0] sm:$0xff]  ;;  %v4003_v24 = vld [vmem:[%s3916_s28 + $0x28] sm:$0xff]  ;;  %v4015_v26 = vld [vmem:[%s3916_s28 + $0xb8] sm:$0xff]  ;;  %s3665_s22 = scalar_lea.vmem %s3664_s18, 8192  ;;  %p3666_p6 = scmp.lt.s32.totalorder %s5304_s13, %s3664_s18 }
  0x47   : > { %3337 = vmatpush3.bf16.msra.mxu1 %v3218_v6  ;;  %3221 = vmatpush3.bf16.msra.mxu0 %v3218_v6  ;;  %5433 = vst [vmem:[#allocation15_spill] sm:$0xff] %v3998_v23  ;;  %v4008_v25 = vld [vmem:[%s3916_s28 + $0x30] sm:$0xff]  ;;  %5434 = vst [vmem:[#allocation16_spill] sm:$0xff] %v4015_v26  ;;  %v4020_v27 = vld [vmem:[%s3916_s28 + $0xc0] sm:$0xff]  ;;  %p3662_p0 = pneg %p3661_p11  ;;  %p3667_p13 = scmp.lt.s32.totalorder %s3665_s22, %s3659_s17 }
  0x48   : > { %3223 = vmatprep.subr.bf16.mxu1 %v3222_v9  ;;  %5435 = vst [vmem:[#allocation17_spill] sm:$0xff] %v4020_v27  ;;  %v4023_v28 = vld [vmem:[%s3916_s28 + $0x38] sm:$0xff]  ;;  %v4028_v29 = vld [vmem:[%s3916_s28 + $0x40] sm:$0xff]  ;;  %v4035_v30 = vld [vmem:[%s3916_s28 + $0xc8] sm:$0xff] }
  0x49   : > { %5436 = vst [vmem:[#allocation18_spill] sm:$0xff] %v4023_v28  ;;  %5437 = vst [vmem:[#allocation19_spill] sm:$0xff] %v4028_v29  ;;  %v4040_v31 = vld [vmem:[%s3916_s28 + $0xd0] sm:$0xff]  ;;  %v4043_v32 = vld [vmem:[%s3916_s28 + $0x48] sm:$0xff]  ;;  %p3668_p2 = por %p3667_p13, %p3666_p6 }
  0x4a   : > { %3079 = vmatmul.mubr.msk.f32.vlgmr.msra.gmra.mrb[0].mxu1 %vm417_vm0, %v3952_v12  ;;  %3055 = vmatmul.mubr.msk.f32.vlgmr.msra.gmra.mrb[0].mxu0 %vm417_vm0, %v3963_v16  ;;  %5438 = vst [vmem:[#allocation20_spill] sm:$0xff] %v4035_v30  ;;  %5439 = vst [vmem:[#allocation21_spill] sm:$0xff] %v4040_v31  ;;  %v4048_v33 = vld [vmem:[%s3916_s28 + $0x50] sm:$0xff]  ;;  %v4055_v34 = vld [vmem:[%s3916_s28 + $0xd8] sm:$0xff] }
  0x4b   : > { %3225 = vmatpush3.bf16.msra.mxu1 %v3222_v9  ;;  %3081 = vmatprep.mubr.msk.f32.mxu1 %vm417_vm0, %v3958_v14  ;;  %5440 = vst [vmem:[#allocation22_spill] sm:$0xff] %v4043_v32  ;;  %5441 = vst [vmem:[#allocation23_spill] sm:$0xff] %v4048_v33  ;;  %v4060_v35 = vld [vmem:[%s3916_s28 + $0xe0] sm:$0xff]  ;;  %v4063_v36 = vld [vmem:[%s3916_s28 + $0x58] sm:$0xff]  ;;  %p3669_p5 = pnand %p3668_p2, %p3662_p0 }
  0x4c   : > { %3227 = vmatprep.subr.bf16.mxu1 %v3226_v15  ;;  %3057 = vmatprep.mubr.msk.f32.mxu0 %vm417_vm0, %v3975_v18  ;;  %5442 = vst [vmem:[#allocation24_spill] sm:$0xff] %v4055_v34  ;;  %5443 = vst [vmem:[#allocation25_spill] sm:$0xff] %v4060_v35  ;;  %v4068_v37 = vld [vmem:[%s3916_s28 + $0x60] sm:$0xff]  ;;  %v4075_v38 = vld [vmem:[%s3916_s28 + $0xe8] sm:$0xff] }
  0x4d   : > { %5444 = vst [vmem:[#allocation26_spill] sm:$0xff] %v4063_v36  ;;  %5445 = vst [vmem:[#allocation27_spill] sm:$0xff] %v4068_v37  ;;  %v4080_v39 = vld [vmem:[%s3916_s28 + $0xf0] sm:$0xff]  ;;  %v4083_v40 = vld [vmem:[%s3916_s28 + $0x68] sm:$0xff] }
  0x4e   : > { %3082 = vmatmul.mubr.msk.f32.gmra.mrb[2].mxu1 %vm417_vm0, %v3972_v17  ;;  %3058 = vmatmul.mubr.msk.f32.gmra.mrb[2].mxu0 %vm417_vm0, %v3983_v20  ;;  %5446 = vst [vmem:[#allocation28_spill] sm:$0xff] %v4075_v38  ;;  %5447 = vst [vmem:[#allocation29_spill] sm:$0xff] %v4080_v39  ;;  %v4088_v41 = vld [vmem:[%s3916_s28 + $0x70] sm:$0xff]  ;;  %v4095_v42 = vld [vmem:[%s3916_s28 + $0xf8] sm:$0xff] }
  0x4f   : > { %3084 = vmatprep.mubr.msk.f32.mxu1 %vm417_vm0, %v3978_v19  ;;  %3229 = vmatpush3.bf16.msra.mxu1 %v3226_v15  ;;  %5448 = vst [vmem:[#allocation30_spill] sm:$0xff] %v4083_v40  ;;  %5449 = vst [vmem:[#allocation31_spill] sm:$0xff] %v4088_v41  ;;  %v4100_v43 = vld [vmem:[%s3916_s28 + $0x78] sm:$0xff]  ;;  %v4175_v44 = vld [vmem:[%s5359_s3] ss:$0 sm:$0xff] }
  0x50   : > { %3060 = vmatprep.mubr.msk.f32.mxu0 %vm417_vm0, %v3995_v22  ;;  %5450 = vst [vmem:[#allocation32_spill] sm:$0xff] %v4095_v42  ;;  %5451 = vst [vmem:[#allocation33_spill] sm:$0xff] %v4100_v43 }
  0x51   : > { %vm4336_vm2 = vmpackc.low %vm1307_vm1, %vm1307_vm1 }
  0x52   : > { %3085 = vmatmul.mubr.msk.f32.gmra.mrb[4].mxu1 %vm417_vm0, %v3992_v21  ;;  %3061 = vmatmul.mubr.msk.f32.gmra.mrb[4].mxu0 %vm417_vm0, %v4003_v24 }
  0x53   : > { %3087 = vmatprep.mubr.msk.f32.mxu1 %vm417_vm0, %v3998_v23  ;;  %3063 = vmatprep.mubr.msk.f32.mxu0 %vm417_vm0, %v4008_v25 }
  0x56   : > { %3088 = vmatmul.mubr.msk.f32.gmra.mrb[6].mxu1 %vm417_vm0, %v4015_v26  ;;  %3064 = vmatmul.mubr.msk.f32.gmra.mrb[6].mxu0 %vm417_vm0, %v4023_v28 }
  0x57   : > { %3090 = vmatprep.mubr.msk.f32.mxu1 %vm417_vm0, %v4020_v27  ;;  %3066 = vmatprep.mubr.msk.f32.mxu0 %vm417_vm0, %v4028_v29 }
  0x5a   : > { %3091 = vmatmul.mubr.msk.f32.gmra.mrb[8].mxu1 %vm417_vm0, %v4035_v30  ;;  %3067 = vmatmul.mubr.msk.f32.gmra.mrb[8].mxu0 %vm417_vm0, %v4043_v32 }
  0x5b   : > { %3093 = vmatprep.mubr.msk.f32.mxu1 %vm417_vm0, %v4040_v31  ;;  %3069 = vmatprep.mubr.msk.f32.mxu0 %vm417_vm0, %v4048_v33 }
  0x5e   : > { %3094 = vmatmul.mubr.msk.f32.gmra.mrb[10].mxu1 %vm417_vm0, %v4055_v34  ;;  %3070 = vmatmul.mubr.msk.f32.gmra.mrb[10].mxu0 %vm417_vm0, %v4063_v36 }
  0x5f   : > { %3096 = vmatprep.mubr.msk.f32.mxu1 %vm417_vm0, %v4060_v35  ;;  %3072 = vmatprep.mubr.msk.f32.mxu0 %vm417_vm0, %v4068_v37 }
  0x62   : > { %3097 = vmatmul.mubr.msk.f32.gmra.mrb[12].mxu1 %vm417_vm0, %v4075_v38  ;;  %3073 = vmatmul.mubr.msk.f32.gmra.mrb[12].mxu0 %vm417_vm0, %v4083_v40 }
  0x63   : > { %3099 = vmatprep.mubr.msk.f32.mxu1 %vm417_vm0, %v4080_v39  ;;  %3075 = vmatprep.mubr.msk.f32.mxu0 %vm417_vm0, %v4088_v41 }
  0x66   : > { %3100 = vmatmul.mubr.msk.f32.gmra.mrb[14].mxu1 %vm417_vm0, %v4095_v42  ;;  %3076 = vmatmul.mubr.msk.f32.gmra.mrb[14].mxu0 %vm417_vm0, %v4100_v43 }
  0x67   : > { %3110 = vmatprep.mubr.msk.f32.mxu1 %vm417_vm0, %v3955_v13  ;;  %3166 = vmatprep.mubr.msk.f32.mxu0 %vm417_vm0, %v3955_v13 }
  0x6a   : > { %3111 = vmatmul.mubr.msk.f32.vlgmr.msra.gmra.mrb[16].mxu1 %vm417_vm0, %v3963_v16 }
  0x6b   : > { %3113 = vmatprep.mubr.msk.f32.mxu1 %vm417_vm0, %v3975_v18 }
  0x6e   : > { %3114 = vmatmul.mubr.msk.f32.gmra.mrb[18].mxu1 %vm417_vm0, %v3983_v20 }
  0x6f   : > { %3116 = vmatprep.mubr.msk.f32.mxu1 %vm417_vm0, %v3995_v22 }
  0x72   : > { %3117 = vmatmul.mubr.msk.f32.gmra.mrb[20].mxu1 %vm417_vm0, %v4003_v24 }
  0x73   : > { %3119 = vmatprep.mubr.msk.f32.mxu1 %vm417_vm0, %v4008_v25 }
  0x76   : > { %3120 = vmatmul.mubr.msk.f32.gmra.mrb[22].mxu1 %vm417_vm0, %v4023_v28 }
  0x77   : > { %3122 = vmatprep.mubr.msk.f32.mxu1 %vm417_vm0, %v4028_v29 }
  0x7a   : > { %3123 = vmatmul.mubr.msk.f32.gmra.mrb[24].mxu1 %vm417_vm0, %v4043_v32 }
  0x7b   : > { %3125 = vmatprep.mubr.msk.f32.mxu1 %vm417_vm0, %v4048_v33 }
  0x7e   : > { %3126 = vmatmul.mubr.msk.f32.gmra.mrb[26].mxu1 %vm417_vm0, %v4063_v36 }
  0x7f   : > { %3128 = vmatprep.mubr.msk.f32.mxu1 %vm417_vm0, %v4068_v37 }
  0x82   : > { %3129 = vmatmul.mubr.msk.f32.gmra.mrb[28].mxu1 %vm417_vm0, %v4083_v40 }
  0x83   : > { %3131 = vmatprep.mubr.msk.f32.mxu1 %vm417_vm0, %v4088_v41 }
  0x86   : > { %3132 = vmatmul.mubr.msk.f32.gmra.mrb[30].mxu1 %vm417_vm0, %v4100_v43 }
  0x87   : > { %3134 = vmatprep.mubr.msk.f32.mxu1 %vm417_vm0, %v3935_v5 }
  0x8a   : > { %3135 = vmatmul.mubr.msk.f32.gmra.mrb[32].mxu1 %vm417_vm0, %v3952_v12 }
  0x8b   : > { %3137 = vmatprep.mubr.msk.f32.mxu1 %vm417_vm0, %v3958_v14 }
  0x8e   : > { %3138 = vmatmul.mubr.msk.f32.gmra.mrb[34].mxu1 %vm417_vm0, %v3972_v17 }
  0x8f   : > { %3140 = vmatprep.mubr.msk.f32.mxu1 %vm417_vm0, %v3978_v19 }
  0x92   : > { %3141 = vmatmul.mubr.msk.f32.gmra.mrb[36].mxu1 %vm417_vm0, %v3992_v21 }
  0x93   : > { %3143 = vmatprep.mubr.msk.f32.mxu1 %vm417_vm0, %v3998_v23 }
  0x96   : > { %3144 = vmatmul.mubr.msk.f32.gmra.mrb[38].mxu1 %vm417_vm0, %v4015_v26 }
  0x97   : > { %3146 = vmatprep.mubr.msk.f32.mxu1 %vm417_vm0, %v4020_v27 }
  0x9a   : > { %3147 = vmatmul.mubr.msk.f32.gmra.mrb[40].mxu1 %vm417_vm0, %v4035_v30 }
  0x9b   : > { %3149 = vmatprep.mubr.msk.f32.mxu1 %vm417_vm0, %v4040_v31 }
  0x9e   : > { %3150 = vmatmul.mubr.msk.f32.gmra.mrb[42].mxu1 %vm417_vm0, %v4055_v34 }
  0x9f   : > { %3152 = vmatprep.mubr.msk.f32.mxu1 %vm417_vm0, %v4060_v35 }
  0xa2   : > { %3153 = vmatmul.mubr.msk.f32.gmra.mrb[44].mxu1 %vm417_vm0, %v4075_v38 }
  0xa3   : > { %3155 = vmatprep.mubr.msk.f32.mxu1 %vm417_vm0, %v4080_v39 }
  0xa6   : > { %3156 = vmatmul.mubr.msk.f32.gmra.mrb[46].mxu1 %vm417_vm0, %v4095_v42 }
 0x11d   : > { %v3080_v45 = vpop.f32.mrb[0].mxu1  ;;  %v3056_v46 = vpop.f32.mrb[0].mxu0 }
 0x11e   : > { %v4178_v47 = vadd.f32 %v3080_v45, %v4175_v44  ;;  %v660_v48 = vpop.f32.mrb[1].mxu1  ;;  %v4181_v49 = vadd.f32 %v3056_v46, %v4175_v44  ;;  %v580_v50 = vpop.f32.mrb[1].mxu0 }
 0x11f   : > { %v4184_v51 = vadd.f32 %v4175_v44, %v660_v48  ;;  %v4187_v52 = vadd.f32 %v4175_v44, %v580_v50 }
 0x121   : > { %v3083_v53 = vpop.f32.mrb[2].mxu1  ;;  %2982 = vmatprep.mubr.msk.f32.mxu1 %vm1307_vm1, %v4187_v52  ;;  %v3059_v57 = vpop.f32.mrb[2].mxu0 }
 0x122   : > { %v4192_v54 = vadd.f32 %v3083_v53, %v4175_v44  ;;  %v670_v55 = vpop.f32.mrb[3].mxu1  ;;  %v4198_v59 = vadd.f32 %v3059_v57, %v4175_v44  ;;  %v590_v60 = vpop.f32.mrb[3].mxu0 }
 0x123   : > { %v4195_v56 = vadd.f32 %v4175_v44, %v670_v55  ;;  %v4204_v63 = vadd.f32 %v4175_v44, %v590_v60 }
 0x125   : > { %v3086_v58 = vpop.f32.mrb[4].mxu1  ;;  %v3062_v6 = vpop.f32.mrb[4].mxu0 }
 0x126   : > { %v4201_v61 = vadd.f32 %v3086_v58, %v4175_v44  ;;  %v680_v62 = vpop.f32.mrb[5].mxu1  ;;  %v4216_v8 = vadd.f32 %v3062_v6, %v4175_v44  ;;  %v600_v9 = vpop.f32.mrb[5].mxu0 }
 0x127   : > { %v4207_v0 = vadd.f32 %v4175_v44, %v680_v62  ;;  %v4222_v13 = vadd.f32 %v4175_v44, %v600_v9 }
 0x129   : > { %v3089_v1 = vpop.f32.mrb[6].mxu1  ;;  %v3065_v53 = vpop.f32.mrb[6].mxu0 }
 0x12a   : > { %v4210_v2 = vadd.f32 %v3089_v1, %v4175_v44  ;;  %v690_v3 = vpop.f32.mrb[7].mxu1  ;;  %v4234_v57 = vadd.f32 %v3065_v53, %v4175_v44  ;;  %v610_v58 = vpop.f32.mrb[7].mxu0 }
 0x12b   : > { %v4213_v4 = vadd.f32 %v4175_v44, %v690_v3  ;;  %v4240_v1 = vadd.f32 %v4175_v44, %v610_v58 }
 0x12d   : > { %v3092_v7 = vpop.f32.mrb[8].mxu1 }
 0x12e   : > { %v4219_v10 = vadd.f32 %v3092_v7, %v4175_v44  ;;  %v700_v11 = vpop.f32.mrb[9].mxu1 }
 0x12f   : > { %v4225_v15 = vadd.f32 %v4175_v44, %v700_v11 }
 0x131   : > { %v3095_v45 = vpop.f32.mrb[10].mxu1 }
 0x132   : > { %v4228_v46 = vadd.f32 %v3095_v45, %v4175_v44  ;;  %v710_v48 = vpop.f32.mrb[11].mxu1  ;;  %v4254_v45 = vld [vmem:[%s5361_s5] ss:$0 sm:$0xff] }
 0x133   : > { %v4231_v50 = vadd.f32 %v4175_v44, %v710_v48  ;;  %v3068_v48 = vpop.f32.mrb[8].mxu0 }
 0x134   : > { %v620_v58 = vpop.f32.mrb[9].mxu0 }
 0x135   : > { %v3098_v55 = vpop.f32.mrb[12].mxu1  ;;  %v4263_v42 = vadd.f32 %v4175_v44, %v620_v58  ;;  %v3071_v31 = vpop.f32.mrb[10].mxu0 }
 0x136   : > { %v4237_v60 = vadd.f32 %v3098_v55, %v4175_v44  ;;  %v720_v62 = vpop.f32.mrb[13].mxu1  ;;  %v4257_v55 = vadd.f32 %v3068_v48, %v4175_v44  ;;  %v4276_v58 = vadd.f32 %v3071_v31, %v4175_v44  ;;  %v630_v27 = vpop.f32.mrb[11].mxu0 }
 0x137   : > { %v4243_v3 = vadd.f32 %v4175_v44, %v720_v62 }
 0x139   : > { %v3101_v6 = vpop.f32.mrb[14].mxu1 }
 0x13a   : > { %v4246_v7 = vadd.f32 %v3101_v6, %v4175_v44  ;;  %v730_v9 = vpop.f32.mrb[15].mxu1 }
 0x13b   : > { %v4249_v11 = vadd.f32 %v4175_v44, %v730_v9 }
 0x13c   : > { %5452 = vst [vmem:[#allocation34_spill] sm:$0xff] %v4246_v7 }
 0x13d   : > { %v3112_v53 = vpop.f32.mrb[16].mxu1 }
 0x13e   : > { %v4260_v62 = vadd.f32 %v3112_v53, %v4254_v45  ;;  %v912_v6 = vpop.f32.mrb[17].mxu1 }
 0x13f   : > { %v913_v9 = vadd.f32 %v4254_v45, %v912_v6 }
 0x141   : > { %v3241_v39 = vpack.c.bf16 %v4260_v62, %v913_v9  ;;  %v3115_v38 = vpop.f32.mrb[18].mxu1 }
 0x142   : > { %v4268_v35 = vadd.f32 %v3115_v38, %v4254_v45  ;;  %v922_v34 = vpop.f32.mrb[19].mxu1  ;;  %v4282_v38 = vadd.f32 %v4175_v44, %v630_v27 }
 0x143   : > { %v4271_v48 = vadd.f32 %v4254_v45, %v922_v34 }
 0x145   : > { %v3118_v30 = vpop.f32.mrb[20].mxu1 }
 0x146   : > { %v4279_v6 = vadd.f32 %v3118_v30, %v4254_v45  ;;  %v932_v62 = vpop.f32.mrb[21].mxu1  ;;  %v3074_v30 = vpop.f32.mrb[12].mxu0 }
 0x147   : > { %v4285_v9 = vadd.f32 %v4254_v45, %v932_v62  ;;  %v4298_v19 = vadd.f32 %v3074_v30, %v4175_v44  ;;  %v640_v62 = vpop.f32.mrb[13].mxu0 }
 0x149   : > { %v3121_v26 = vpop.f32.mrb[22].mxu1 }
 0x14a   : > { %v4290_v53 = vadd.f32 %v3121_v26, %v4254_v45  ;;  %v942_v31 = vpop.f32.mrb[23].mxu1  ;;  %v4304_v26 = vadd.f32 %v4175_v44, %v640_v62 }
 0x14b   : > { %v4293_v23 = vadd.f32 %v4254_v45, %v942_v31 }
 0x14d   : > { %v3124_v27 = vpop.f32.mrb[24].mxu1 }
 0x14e   : > { %v4301_v17 = vadd.f32 %v3124_v27, %v4254_v45  ;;  %v952_v34 = vpop.f32.mrb[25].mxu1  ;;  %v3077_v27 = vpop.f32.mrb[14].mxu0 }
 0x14f   : > { %v4307_v14 = vadd.f32 %v4254_v45, %v952_v34  ;;  %v4320_v41 = vadd.f32 %v3077_v27, %v4175_v44  ;;  %v650_v34 = vpop.f32.mrb[15].mxu0 }
 0x151   : > { %v3127_v12 = vpop.f32.mrb[26].mxu1 }
 0x152   : > { %v4312_v21 = vadd.f32 %v3127_v12, %v4254_v45  ;;  %v962_v30 = vpop.f32.mrb[27].mxu1  ;;  %v4326_v12 = vadd.f32 %v4175_v44, %v650_v34 }
 0x153   : > { %v4315_v5 = vadd.f32 %v4254_v45, %v962_v30 }
 0x155   : > { %v3130_v62 = vpop.f32.mrb[28].mxu1 }
 0x156   : > { %v4323_v40 = vadd.f32 %v3130_v62, %v4254_v45  ;;  %v972_v31 = vpop.f32.mrb[29].mxu1 }
 0x157   : > { %v973_v37 = vadd.f32 %v4254_v45, %v972_v31 }
 0x159   : > { %v3277_v30 = vpack.c.bf16 %v4323_v40, %v973_v37  ;;  %v3133_v36 = vpop.f32.mrb[30].mxu1 }
 0x15a   : > { %v988_v33 = vadd.f32 %v3133_v36, %v4254_v45  ;;  %v982_v43 = vpop.f32.mrb[31].mxu1 }
 0x15b   : > { %v983_v32 = vadd.f32 %v4254_v45, %v982_v43 }
 0x15d   : > { %v3283_v27 = vpack.c.bf16 %v988_v33, %v983_v32  ;;  %v3136_v29 = vpop.f32.mrb[32].mxu1 }
 0x15e   : > { %v998_v28 = vadd.f32 %v3136_v29, %v4254_v45  ;;  %v992_v62 = vpop.f32.mrb[33].mxu1 }
 0x15f   : > { %v993_v7 = vadd.f32 %v4254_v45, %v992_v62 }
 0x161   : > { %v3238_v37 = vpack.c.bf16 %v998_v28, %v993_v7  ;;  %v3139_v40 = vpop.f32.mrb[34].mxu1 }
 0x162   : > { %v1008_v36 = vadd.f32 %v3139_v40, %v4254_v45  ;;  %v1002_v31 = vpop.f32.mrb[35].mxu1 }
 0x163   : > { %3240 = vmatprep.subr.msk.bf16.mxu1 %vm4336_vm2, %v3238_v37  ;;  %v1003_v32 = vadd.f32 %v4254_v45, %v1002_v31 }
 0x164   : > { %3243 = vmatpush3.bf16.xpose.msk.msra.mxu1 %vm4336_vm2, %v3241_v39  ;;  %v5455_v39 = vpack.c.bf16 %v4268_v35, %v4271_v48  ;;  %v5456_v48 = vpack.c.bf16 %v4279_v6, %v4285_v9  ;;  %v5457_v9 = vpack.c.bf16 %v4290_v53, %v4293_v23 }
 0x165   : > { %v3244_v29 = vpack.c.bf16 %v1008_v36, %v1003_v32  ;;  %v3142_v33 = vpop.f32.mrb[36].mxu1 }
 0x166   : > { %v1018_v43 = vadd.f32 %v3142_v33, %v4254_v45  ;;  %v1012_v34 = vpop.f32.mrb[37].mxu1 }
 0x167   : > { %3246 = vmatprep.subr.msk.bf16.mxu1 %vm4336_vm2, %v3244_v29  ;;  %v1013_v28 = vadd.f32 %v4254_v45, %v1012_v34 }
 0x169   : > { %v3250_v7 = vpack.c.bf16 %v1018_v43, %v1013_v28  ;;  %v3145_v62 = vpop.f32.mrb[38].mxu1 }
 0x16a   : > { %v1028_v40 = vadd.f32 %v3145_v62, %v4254_v45  ;;  %v1022_v37 = vpop.f32.mrb[39].mxu1 }
 0x16b   : > { %v1023_v31 = vadd.f32 %v4254_v45, %v1022_v37 }
 0x16c   : > { %3249 = vmatpush3.bf16.xpose.msk.msra.mxu1 %vm4336_vm2, %v5455_v39 }
 0x16d   : > { %3252 = vmatprep.subr.msk.bf16.mxu1 %vm4336_vm2, %v3250_v7  ;;  %v3256_v36 = vpack.c.bf16 %v1028_v40, %v1023_v31  ;;  %v3148_v32 = vpop.f32.mrb[40].mxu1 }
 0x16e   : > { %v1038_v29 = vadd.f32 %v3148_v32, %v4254_v45  ;;  %v1032_v33 = vpop.f32.mrb[41].mxu1 }
 0x16f   : > { %v1033_v43 = vadd.f32 %v4254_v45, %v1032_v33 }
 0x171   : > { %v3262_v34 = vpack.c.bf16 %v1038_v29, %v1033_v43  ;;  %v3151_v28 = vpop.f32.mrb[42].mxu1 }
 0x172   : > { %v1048_v62 = vadd.f32 %v3151_v28, %v4254_v45  ;;  %v1042_v37 = vpop.f32.mrb[43].mxu1 }
 0x173   : > { %v1043_v35 = vadd.f32 %v4254_v45, %v1042_v37 }
 0x174   : > { %3255 = vmatpush3.bf16.xpose.msk.msra.mxu1 %vm4336_vm2, %v5456_v48 }
 0x175   : > { %3258 = vmatprep.subr.msk.bf16.mxu1 %vm4336_vm2, %v3256_v36  ;;  %v3268_v7 = vpack.c.bf16 %v1048_v62, %v1043_v35  ;;  %v3154_v40 = vpop.f32.mrb[44].mxu1  ;;  %v5458_v62 = vpack.c.bf16 %v4301_v17, %v4307_v14  ;;  %v1072_v14 = vld [vmem:[%s5362_s6 + $0x8] sm:$0xff] }
 0x176   : > { %v1058_v31 = vadd.f32 %v3154_v40, %v4254_v45  ;;  %v1052_v39 = vpop.f32.mrb[45].mxu1 }
 0x177   : > { %v1053_v32 = vadd.f32 %v4254_v45, %v1052_v39 }
 0x179   : > { %v3274_v29 = vpack.c.bf16 %v1058_v31, %v1053_v32  ;;  %v3157_v33 = vpop.f32.mrb[46].mxu1 }
 0x17a   : > { %v1068_v43 = vadd.f32 %v3157_v33, %v4254_v45  ;;  %v1062_v28 = vpop.f32.mrb[47].mxu1 }
 0x17b   : > { %v1063_v6 = vadd.f32 %v4254_v45, %v1062_v28  ;;  %v5459_v45 = vpack.c.bf16 %v4312_v21, %v4315_v5  ;;  %v1071_v5 = vld [vmem:[%s5362_s6] sm:$0xff]  ;;  %v1074_v21 = vld [vmem:[%s5362_s6 + $0x18] sm:$0xff] }
 0x17c   : > { %3261 = vmatpush3.bf16.xpose.msk.msra.mxu1 %vm4336_vm2, %v5457_v9  ;;  %v3230_v17 = vpack.c.bf16 %v1072_v14, %v1071_v5 }
 0x17d   : > { %3264 = vmatprep.subr.msk.bf16.mxu1 %vm4336_vm2, %v3262_v34  ;;  %v3280_v36 = vpack.c.bf16 %v1068_v43, %v1063_v6 }
 0x17e   : > { %3231 = vmatprep.subr.bf16.mxu0 %v3230_v17 }
 0x17f   : > { %3233 = vmatpush3.bf16.msra.mxu0 %v3230_v17 }
 0x184   : > { %3267 = vmatpush3.bf16.xpose.msk.msra.mxu1 %vm4336_vm2, %v5458_v62 }
 0x185   : > { %3270 = vmatprep.subr.msk.bf16.mxu1 %vm4336_vm2, %v3268_v7 }
 0x18c   : > { %3273 = vmatpush3.bf16.xpose.msk.msra.mxu1 %vm4336_vm2, %v5459_v45 }
 0x18d   : > { %3276 = vmatprep.subr.msk.bf16.mxu1 %vm4336_vm2, %v3274_v29 }
 0x194   : > { %3279 = vmatpush3.bf16.xpose.msk.msra.mxu1 %vm4336_vm2, %v3277_v30 }
 0x195   : > { %3282 = vmatprep.subr.msk.bf16.mxu1 %vm4336_vm2, %v3280_v36 }
 0x19c   : > { %3285 = vmatpush3.bf16.xpose.msk.msra.mxu1 %vm4336_vm2, %v3283_v27 }
 0x1a3   : > { %2983 = vmatmul.mubr.msk.f32.vlgmr.msra.gmra.mrb[48].mxu1 %vm1307_vm1, %v4187_v52  ;;  %v5471_v52 = vld [vmem:[#allocation10_spill] sm:$0xff] }
 0x1a4   : > { %2984 = vmatprep.mubr.msk.f32.mxu1 %vm1307_vm1, %v4181_v49 }
 0x1a7   : > { %2985 = vmatmul.mubr.msk.f32.gmra.mrb[50].mxu1 %vm1307_vm1, %v4181_v49  ;;  %v5469_v49 = vld [vmem:[#allocation33_spill] sm:$0xff] }
 0x1a8   : > { %2986 = vmatprep.mubr.msk.f32.mxu1 %vm1307_vm1, %v4204_v63 }
 0x1ab   : > { %2987 = vmatmul.mubr.msk.f32.gmra.mrb[52].mxu1 %vm1307_vm1, %v4204_v63  ;;  %v5476_v63 = vld [vmem:[#allocation15_spill] sm:$0xff] }
 0x1ac   : > { %2988 = vmatprep.mubr.msk.f32.mxu1 %vm1307_vm1, %v4198_v59 }
 0x1af   : > { %2989 = vmatmul.mubr.msk.f32.gmra.mrb[54].mxu1 %vm1307_vm1, %v4198_v59  ;;  %v5474_v59 = vld [vmem:[#allocation13_spill] sm:$0xff] }
 0x1b0   : > { %2990 = vmatprep.mubr.msk.f32.mxu1 %vm1307_vm1, %v4222_v13 }
 0x1b3   : > { %2991 = vmatmul.mubr.msk.f32.gmra.mrb[56].mxu1 %vm1307_vm1, %v4222_v13  ;;  %v5482_v13 = vld [vmem:[#allocation25_spill] sm:$0xff] }
 0x1b4   : > { %2992 = vmatprep.mubr.msk.f32.mxu1 %vm1307_vm1, %v4216_v8 }
 0x1b7   : > { %2993 = vmatmul.mubr.msk.f32.gmra.mrb[58].mxu1 %vm1307_vm1, %v4216_v8  ;;  %v5480_v8 = vld [vmem:[#allocation21_spill] sm:$0xff] }
 0x1b8   : > { %2994 = vmatprep.mubr.msk.f32.mxu1 %vm1307_vm1, %v4240_v1 }
 0x1bb   : > { %2995 = vmatmul.mubr.msk.f32.gmra.mrb[60].mxu1 %vm1307_vm1, %v4240_v1 }
 0x1bc   : > { %2996 = vmatprep.mubr.msk.f32.mxu1 %vm1307_vm1, %v4234_v57 }
 0x1bf   : > { %2997 = vmatmul.mubr.msk.f32.gmra.mrb[62].mxu1 %vm1307_vm1, %v4234_v57 }
 0x1c0   : > { %2998 = vmatprep.mubr.msk.f32.mxu1 %vm1307_vm1, %v4263_v42 }
 0x1c3   : > { %2999 = vmatmul.mubr.msk.f32.gmra.mrb[64].mxu1 %vm1307_vm1, %v4263_v42  ;;  %v5467_v42 = vld [vmem:[#allocation30_spill] sm:$0xff] }
 0x1c4   : > { %3000 = vmatprep.mubr.msk.f32.mxu1 %vm1307_vm1, %v4257_v55 }
 0x1c7   : > { %3001 = vmatmul.mubr.msk.f32.gmra.mrb[66].mxu1 %vm1307_vm1, %v4257_v55 }
 0x1c8   : > { %3002 = vmatprep.mubr.msk.f32.mxu1 %vm1307_vm1, %v4282_v38 }
 0x1cb   : > { %3003 = vmatmul.mubr.msk.f32.gmra.mrb[68].mxu1 %vm1307_vm1, %v4282_v38 }
 0x1cc   : > { %3004 = vmatprep.mubr.msk.f32.mxu1 %vm1307_vm1, %v4276_v58 }
 0x1cf   : > { %3005 = vmatmul.mubr.msk.f32.gmra.mrb[70].mxu1 %vm1307_vm1, %v4276_v58 }
 0x1d0   : > { %3006 = vmatprep.mubr.msk.f32.mxu1 %vm1307_vm1, %v4304_v26 }
 0x1d3   : > { %3007 = vmatmul.mubr.msk.f32.gmra.mrb[72].mxu1 %vm1307_vm1, %v4304_v26 }
 0x1d4   : > { %3008 = vmatprep.mubr.msk.f32.mxu1 %vm1307_vm1, %v4298_v19 }
 0x1d7   : > { %3009 = vmatmul.mubr.msk.f32.gmra.mrb[74].mxu1 %vm1307_vm1, %v4298_v19  ;;  %v1073_v19 = vld [vmem:[%s5362_s6 + $0x10] sm:$0xff] }
 0x1d8   : > { %3010 = vmatprep.mubr.msk.f32.mxu1 %vm1307_vm1, %v4326_v12  ;;  %v3234_v23 = vpack.c.bf16 %v1074_v21, %v1073_v19 }
 0x1da   : > { %3235 = vmatprep.subr.bf16.mxu0 %v3234_v23 }
 0x1db   : > { %3011 = vmatmul.mubr.msk.f32.gmra.mrb[76].mxu1 %vm1307_vm1, %v4326_v12  ;;  %3237 = vmatpush3.bf16.msra.mxu0 %v3234_v23 }
 0x1dc   : > { %3012 = vmatprep.mubr.msk.f32.mxu1 %vm1307_vm1, %v4320_v41 }
 0x1de   : > { %3167 = vmatmul.mubr.msk.f32.vlgmr.msra.gmra.mrb[16].mxu0 %vm417_vm0, %v3963_v16  ;;  %v5460_v16 = vld [vmem:[#allocation34_spill] sm:$0xff] }
 0x1df   : > { %3013 = vmatmul.mubr.msk.f32.gmra.mrb[78].mxu1 %vm1307_vm1, %v4320_v41  ;;  %3169 = vmatprep.mubr.msk.f32.mxu0 %vm417_vm0, %v3975_v18  ;;  %v5461_v18 = vld [vmem:[#allocation18_spill] sm:$0xff] }
 0x1e0   : > { %3014 = vmatprep.mubr.msk.f32.mxu1 %vm1307_vm1, %v4184_v51  ;;  %v5465_v41 = vld [vmem:[#allocation26_spill] sm:$0xff] }
 0x1e2   : > { %3170 = vmatmul.mubr.msk.f32.gmra.mrb[18].mxu0 %vm417_vm0, %v3983_v20  ;;  %v5462_v20 = vld [vmem:[#allocation19_spill] sm:$0xff] }
 0x1e3   : > { %3015 = vmatmul.mubr.msk.f32.gmra.mrb[80].mxu1 %vm1307_vm1, %v4184_v51  ;;  %3172 = vmatprep.mubr.msk.f32.mxu0 %vm417_vm0, %v3995_v22  ;;  %v5463_v22 = vld [vmem:[#allocation22_spill] sm:$0xff]  ;;  %v5470_v51 = vld [vmem:[#allocation9_spill] sm:$0xff] }
 0x1e4   : > { %3016 = vmatprep.mubr.msk.f32.mxu1 %vm1307_vm1, %v4178_v47 }
 0x1e6   : > { %3173 = vmatmul.mubr.msk.f32.gmra.mrb[20].mxu0 %vm417_vm0, %v4003_v24  ;;  %v5464_v24 = vld [vmem:[#allocation23_spill] sm:$0xff] }
 0x1e7   : > { %3017 = vmatmul.mubr.msk.f32.gmra.mrb[82].mxu1 %vm1307_vm1, %v4178_v47  ;;  %3175 = vmatprep.mubr.msk.f32.mxu0 %vm417_vm0, %v4008_v25  ;;  %v5466_v25 = vld [vmem:[#allocation27_spill] sm:$0xff] }
 0x1e8   : > { %3018 = vmatprep.mubr.msk.f32.mxu1 %vm1307_vm1, %v4195_v56  ;;  %v5468_v47 = vld [vmem:[#allocation31_spill] sm:$0xff] }
 0x1ea   : > { %3176 = vmatmul.mubr.msk.f32.gmra.mrb[22].mxu0 %vm417_vm0, %v5461_v18 }
 0x1eb   : > { %3019 = vmatmul.mubr.msk.f32.gmra.mrb[84].mxu1 %vm1307_vm1, %v4195_v56  ;;  %3178 = vmatprep.mubr.msk.f32.mxu0 %vm417_vm0, %v5462_v20  ;;  %v5473_v56 = vld [vmem:[#allocation12_spill] sm:$0xff] }
 0x1ec   : > { %3020 = vmatprep.mubr.msk.f32.mxu1 %vm1307_vm1, %v4192_v54 }
 0x1ee   : > { %3179 = vmatmul.mubr.msk.f32.gmra.mrb[24].mxu0 %vm417_vm0, %v5463_v22 }
 0x1ef   : > { %3021 = vmatmul.mubr.msk.f32.gmra.mrb[86].mxu1 %vm1307_vm1, %v4192_v54  ;;  %3181 = vmatprep.mubr.msk.f32.mxu0 %vm417_vm0, %v5464_v24  ;;  %v5472_v54 = vld [vmem:[#allocation11_spill] sm:$0xff] }
 0x1f0   : > { %3022 = vmatprep.mubr.msk.f32.mxu1 %vm1307_vm1, %v4207_v0 }
 0x1f2   : > { %3182 = vmatmul.mubr.msk.f32.gmra.mrb[26].mxu0 %vm417_vm0, %v5465_v41 }
 0x1f3   : > { %3023 = vmatmul.mubr.msk.f32.gmra.mrb[88].mxu1 %vm1307_vm1, %v4207_v0  ;;  %3184 = vmatprep.mubr.msk.f32.mxu0 %vm417_vm0, %v5466_v25  ;;  %v5477_v0 = vld [vmem:[#allocation16_spill] sm:$0xff] }
 0x1f4   : > { %3024 = vmatprep.mubr.msk.f32.mxu1 %vm1307_vm1, %v4201_v61 }
 0x1f6   : > { %3185 = vmatmul.mubr.msk.f32.gmra.mrb[28].mxu0 %vm417_vm0, %v5467_v42 }
 0x1f7   : > { %3025 = vmatmul.mubr.msk.f32.gmra.mrb[90].mxu1 %vm1307_vm1, %v4201_v61  ;;  %3187 = vmatprep.mubr.msk.f32.mxu0 %vm417_vm0, %v5468_v47  ;;  %v5475_v61 = vld [vmem:[#allocation14_spill] sm:$0xff] }
 0x1f8   : > { %3026 = vmatprep.mubr.msk.f32.mxu1 %vm1307_vm1, %v4213_v4 }
 0x1fa   : > { %3188 = vmatmul.mubr.msk.f32.gmra.mrb[30].mxu0 %vm417_vm0, %v5469_v49 }
 0x1fb   : > { %3027 = vmatmul.mubr.msk.f32.gmra.mrb[92].mxu1 %vm1307_vm1, %v4213_v4  ;;  %3190 = vmatprep.mubr.msk.f32.mxu0 %vm417_vm0, %v5470_v51  ;;  %v5479_v4 = vld [vmem:[#allocation20_spill] sm:$0xff] }
 0x1fc   : > { %3028 = vmatprep.mubr.msk.f32.mxu1 %vm1307_vm1, %v4210_v2 }
 0x1fe   : > { %3191 = vmatmul.mubr.msk.f32.gmra.mrb[32].mxu0 %vm417_vm0, %v5471_v52 }
 0x1ff   : > { %3029 = vmatmul.mubr.msk.f32.gmra.mrb[94].mxu1 %vm1307_vm1, %v4210_v2  ;;  %3193 = vmatprep.mubr.msk.f32.mxu0 %vm417_vm0, %v5472_v54  ;;  %v5478_v2 = vld [vmem:[#allocation17_spill] sm:$0xff] }
 0x200   : > { %3030 = vmatprep.mubr.msk.f32.mxu1 %vm1307_vm1, %v4225_v15 }
 0x202   : > { %3194 = vmatmul.mubr.msk.f32.gmra.mrb[34].mxu0 %vm417_vm0, %v5473_v56 }
 0x203   : > { %3031 = vmatmul.mubr.msk.f32.gmra.mrb[96].mxu1 %vm1307_vm1, %v4225_v15  ;;  %3196 = vmatprep.mubr.msk.f32.mxu0 %vm417_vm0, %v5474_v59  ;;  %v5483_v15 = vld [vmem:[#allocation28_spill] sm:$0xff] }
 0x204   : > { %3032 = vmatprep.mubr.msk.f32.mxu1 %vm1307_vm1, %v4219_v10 }
 0x206   : > { %3197 = vmatmul.mubr.msk.f32.gmra.mrb[36].mxu0 %vm417_vm0, %v5475_v61 }
 0x207   : > { %3033 = vmatmul.mubr.msk.f32.gmra.mrb[98].mxu1 %vm1307_vm1, %v4219_v10  ;;  %3199 = vmatprep.mubr.msk.f32.mxu0 %vm417_vm0, %v5476_v63  ;;  %v5481_v10 = vld [vmem:[#allocation24_spill] sm:$0xff] }
 0x208   : > { %3034 = vmatprep.mubr.msk.f32.mxu1 %vm1307_vm1, %v4231_v50 }
 0x20a   : > { %3200 = vmatmul.mubr.msk.f32.gmra.mrb[38].mxu0 %vm417_vm0, %v5477_v0 }
 0x20b   : > { %3035 = vmatmul.mubr.msk.f32.gmra.mrb[100].mxu1 %vm1307_vm1, %v4231_v50  ;;  %3202 = vmatprep.mubr.msk.f32.mxu0 %vm417_vm0, %v5478_v2  ;;  %v5485_v50 = vld [vmem:[#allocation32_spill] sm:$0xff] }
 0x20c   : > { %3036 = vmatprep.mubr.msk.f32.mxu1 %vm1307_vm1, %v4228_v46 }
 0x20e   : > { %3203 = vmatmul.mubr.msk.f32.gmra.mrb[40].mxu0 %vm417_vm0, %v5479_v4 }
 0x20f   : > { %3037 = vmatmul.mubr.msk.f32.gmra.mrb[102].mxu1 %vm1307_vm1, %v4228_v46  ;;  %3205 = vmatprep.mubr.msk.f32.mxu0 %vm417_vm0, %v5480_v8  ;;  %v5484_v46 = vld [vmem:[#allocation29_spill] sm:$0xff] }
 0x210   : > { %3038 = vmatprep.mubr.msk.f32.mxu1 %vm1307_vm1, %v4243_v3 }
 0x212   : > { %3206 = vmatmul.mubr.msk.f32.gmra.mrb[42].mxu0 %vm417_vm0, %v5481_v10 }
 0x213   : > { %3039 = vmatmul.mubr.msk.f32.gmra.mrb[104].mxu1 %vm1307_vm1, %v4243_v3  ;;  %3208 = vmatprep.mubr.msk.f32.mxu0 %vm417_vm0, %v5482_v13 }
 0x214   : > { %3040 = vmatprep.mubr.msk.f32.mxu1 %vm1307_vm1, %v4237_v60 }
 0x216   : > { %3209 = vmatmul.mubr.msk.f32.gmra.mrb[44].mxu0 %vm417_vm0, %v5483_v15 }
 0x217   : > { %3041 = vmatmul.mubr.msk.f32.gmra.mrb[106].mxu1 %vm1307_vm1, %v4237_v60  ;;  %3211 = vmatprep.mubr.msk.f32.mxu0 %vm417_vm0, %v5484_v46 }
 0x218   : > { %3042 = vmatprep.mubr.msk.f32.mxu1 %vm1307_vm1, %v4249_v11 }
 0x21a   : > { %3212 = vmatmul.mubr.msk.f32.gmra.mrb[46].mxu0 %vm417_vm0, %v5485_v50 }
 0x21b   : > { %3043 = vmatmul.mubr.msk.f32.gmra.mrb[108].mxu1 %vm1307_vm1, %v4249_v11 }
 0x21c   : > { %3044 = vmatprep.mubr.msk.f32.mxu1 %vm1307_vm1, %v5460_v16 }
 0x21f   : > { %3045 = vmatmul.mubr.msk.f32.gmra.mrb[110].mxu1 %vm1307_vm1, %v5460_v16 }
 0x276   : > { %v4601_v57 = vpop.f32.mrb[48].mxu1 }
 0x277   : > { %v4603_v60 = vpop.f32.mrb[49].mxu1 }
 0x278   : > { %v1757_v1 = vmax.f32 %v4601_v57, %v4603_v60 }
 0x27a   : > { %1758 = vmax.xlane.f32.xlu0 %v1757_v1  ;;  %v4607_v3 = vpop.f32.mrb[50].mxu1 }
 0x27b   : > { %v4609_v11 = vpop.f32.mrb[51].mxu1 }
 0x27c   : > { %v1760_v55 = vmax.f32 %v4607_v3, %v4609_v11 }
 0x27e   : > { %1761 = vmax.xlane.f32.xlu0 %v1760_v55  ;;  %v4613_v53 = vpop.f32.mrb[52].mxu1 }
 0x27f   : > { %v4615_v58 = vpop.f32.mrb[53].mxu1 }
 0x280   : > { %v1763_v38 = vmax.f32 %v4613_v53, %v4615_v58 }
 0x282   : > { %1764 = vmax.xlane.f32.xlu1 %v1763_v38  ;;  %v4619_v26 = vpop.f32.mrb[54].mxu1 }
 0x283   : > { %v4621_v12 = vpop.f32.mrb[55].mxu1 }
 0x284   : > { %v1766_v30 = vmax.f32 %v4619_v26, %v4621_v12 }
 0x286   : > { %1767 = vmax.xlane.f32.xlu1 %v1766_v30  ;;  %v4625_v27 = vpop.f32.mrb[56].mxu1 }
 0x287   : > { %v4627_v44 = vpop.f32.mrb[57].mxu1 }
 0x288   : > { %v1769_v34 = vmax.f32 %v4625_v27, %v4627_v44 }
 0x28a   : > { %1770 = vmax.xlane.f32.xlu0 %v1769_v34  ;;  %v4631_v37 = vpop.f32.mrb[58].mxu1 }
 0x28b   : > { %v4633_v35 = vpop.f32.mrb[59].mxu1 }
 0x28c   : > { %v1772_v48 = vmax.f32 %v4631_v37, %v4633_v35 }
 0x28e   : > { %1773 = vmax.xlane.f32.xlu1 %v1772_v48  ;;  %v4637_v7 = vpop.f32.mrb[60].mxu1 }
 0x28f   : > { %v4639_v40 = vpop.f32.mrb[61].mxu1 }
 0x290   : > { %v1775_v31 = vmax.f32 %v4637_v7, %v4639_v40 }
 0x292   : > { %1776 = vmax.xlane.f32.xlu0 %v1775_v31  ;;  %v4643_v39 = vpop.f32.mrb[62].mxu1 }
 0x293   : > { %v4645_v32 = vpop.f32.mrb[63].mxu1 }
 0x294   : > { %v1778_v29 = vmax.f32 %v4643_v39, %v4645_v32 }
 0x296   : > { %1779 = vmax.xlane.f32.xlu1 %v1778_v29  ;;  %v4649_v33 = vpop.f32.mrb[64].mxu1 }
 0x297   : > { %v4651_v43 = vpop.f32.mrb[65].mxu1 }
 0x298   : > { %v1781_v28 = vmax.f32 %v4649_v33, %v4651_v43 }
 0x29a   : > { %1782 = vmax.xlane.f32.xlu0 %v1781_v28  ;;  %v4655_v6 = vpop.f32.mrb[66].mxu1 }
 0x29b   : > { %v4657_v9 = vpop.f32.mrb[67].mxu1 }
 0x29c   : > { %v1784_v36 = vmax.f32 %v4655_v6, %v4657_v9 }
 0x29e   : > { %1785 = vmax.xlane.f32.xlu1 %v1784_v36  ;;  %v4661_v62 = vpop.f32.mrb[68].mxu1 }
 0x29f   : > { %v4663_v45 = vpop.f32.mrb[69].mxu1 }
 0x2a0   : > { %v1787_v5 = vmax.f32 %v4661_v62, %v4663_v45 }
 0x2a2   : > { %1788 = vmax.xlane.f32.xlu0 %v1787_v5  ;;  %v4667_v14 = vpop.f32.mrb[70].mxu1 }
 0x2a3   : > { %v4669_v17 = vpop.f32.mrb[71].mxu1 }
 0x2a4   : > { %v1790_v19 = vmax.f32 %v4667_v14, %v4669_v17 }
 0x2a6   : > { %1791 = vmax.xlane.f32.xlu1 %v1790_v19  ;;  %v4673_v21 = vpop.f32.mrb[72].mxu1 }
 0x2a7   : > { %v4675_v23 = vpop.f32.mrb[73].mxu1 }
 0x2a8   : > { %v1793_v16 = vmax.f32 %v4673_v21, %v4675_v23 }
 0x2aa   : > { %1794 = vmax.xlane.f32.xlu0 %v1793_v16  ;;  %v4679_v18 = vpop.f32.mrb[74].mxu1 }
 0x2ab   : > { %v4681_v20 = vpop.f32.mrb[75].mxu1 }
 0x2ac   : > { %v1796_v22 = vmax.f32 %v4679_v18, %v4681_v20 }
 0x2ae   : > { %1797 = vmax.xlane.f32.xlu1 %v1796_v22  ;;  %v4685_v24 = vpop.f32.mrb[76].mxu1 }
 0x2af   : > { %v4687_v41 = vpop.f32.mrb[77].mxu1 }
 0x2b0   : > { %v1799_v25 = vmax.f32 %v4685_v24, %v4687_v41 }
 0x2b2   : > { %1800 = vmax.xlane.f32.xlu0 %v1799_v25  ;;  %v4691_v42 = vpop.f32.mrb[78].mxu1 }
 0x2b3   : > { %v4693_v47 = vpop.f32.mrb[79].mxu1 }
 0x2b4   : > { %v1802_v49 = vmax.f32 %v4691_v42, %v4693_v47 }
 0x2b6   : > { %1803 = vmax.xlane.f32.xlu1 %v1802_v49  ;;  %v4697_v51 = vpop.f32.mrb[80].mxu1 }
 0x2b7   : > { %v4699_v52 = vpop.f32.mrb[81].mxu1 }
 0x2b8   : > { %v1805_v54 = vmax.f32 %v4697_v51, %v4699_v52 }
 0x2ba   : > { %1806 = vmax.xlane.f32.xlu0 %v1805_v54  ;;  %v4703_v56 = vpop.f32.mrb[82].mxu1 }
 0x2bb   : > { %v4705_v59 = vpop.f32.mrb[83].mxu1 }
 0x2bc   : > { %v1808_v61 = vmax.f32 %v4703_v56, %v4705_v59 }
 0x2be   : > { %1809 = vmax.xlane.f32.xlu1 %v1808_v61  ;;  %v4709_v63 = vpop.f32.mrb[84].mxu1 }
 0x2bf   : > { %v4711_v0 = vpop.f32.mrb[85].mxu1 }
 0x2c0   : > { %v1811_v2 = vmax.f32 %v4709_v63, %v4711_v0 }
 0x2c2   : > { %1812 = vmax.xlane.f32.xlu0 %v1811_v2  ;;  %v4715_v4 = vpop.f32.mrb[86].mxu1 }
 0x2c3   : > { %v4717_v8 = vpop.f32.mrb[87].mxu1 }
 0x2c4   : > { %v1814_v10 = vmax.f32 %v4715_v4, %v4717_v8 }
 0x2c6   : > { %1815 = vmax.xlane.f32.xlu1 %v1814_v10  ;;  %v4721_v13 = vpop.f32.mrb[88].mxu1 }
 0x2c7   : > { %v4723_v15 = vpop.f32.mrb[89].mxu1 }
 0x2c8   : > { %v1817_v46 = vmax.f32 %v4721_v13, %v4723_v15 }
 0x2ca   : > { %1818 = vmax.xlane.f32.xlu0 %v1817_v46  ;;  %v4727_v50 = vpop.f32.mrb[90].mxu1 }
 0x2cb   : > { %v4729_v1 = vpop.f32.mrb[91].mxu1 }
 0x2cc   : > { %v1820_v55 = vmax.f32 %v4727_v50, %v4729_v1 }
 0x2ce   : > { %1821 = vmax.xlane.f32.xlu1 %v1820_v55  ;;  %v4733_v38 = vpop.f32.mrb[92].mxu1 }
 0x2cf   : > { %v4735_v30 = vpop.f32.mrb[93].mxu1 }
 0x2d0   : > { %v1823_v34 = vmax.f32 %v4733_v38, %v4735_v30 }
 0x2d2   : > { %1824 = vmax.xlane.f32.xlu0 %v1823_v34  ;;  %v4739_v48 = vpop.f32.mrb[94].mxu1 }
 0x2d3   : > { %5486 = vst [vmem:[#allocation34_spill] sm:$0xff] %v4739_v48  ;;  %v4741_v31 = vpop.f32.mrb[95].mxu1 }
 0x2d4   : > { %5487 = vst [vmem:[#allocation18_spill] sm:$0xff] %v4741_v31  ;;  %v1826_v29 = vmax.f32 %v4739_v48, %v4741_v31 }
 0x2d6   : > { %1827 = vmax.xlane.f32.xlu0 %v1826_v29  ;;  %v4745_v28 = vpop.f32.mrb[96].mxu1 }
 0x2d7   : > { %5488 = vst [vmem:[#allocation19_spill] sm:$0xff] %v4745_v28  ;;  %v4747_v36 = vpop.f32.mrb[97].mxu1 }
 0x2d8   : > { %5489 = vst [vmem:[#allocation22_spill] sm:$0xff] %v4747_v36  ;;  %v1829_v5 = vmax.f32 %v4745_v28, %v4747_v36 }
 0x2da   : > { %1830 = vmax.xlane.f32.xlu0 %v1829_v5  ;;  %v4751_v19 = vpop.f32.mrb[98].mxu1 }
 0x2db   : > { %5490 = vst [vmem:[#allocation23_spill] sm:$0xff] %v4751_v19  ;;  %v4753_v16 = vpop.f32.mrb[99].mxu1 }
 0x2dc   : > { %5491 = vst [vmem:[#allocation26_spill] sm:$0xff] %v4753_v16  ;;  %v1832_v22 = vmax.f32 %v4751_v19, %v4753_v16  ;;  %v3746_v19 = vmov 0.0|0.0  }
 0x2dd   : > { %3286 = vmatprep.subr.bf16.mxu0 %v3746_v19 }
 0x2de   : > { %1833 = vmax.xlane.f32.xlu0 %v1832_v22  ;;  %v4757_v25 = vpop.f32.mrb[100].mxu1 }
 0x2df   : > { %5492 = vst [vmem:[#allocation27_spill] sm:$0xff] %v4757_v25  ;;  %v4759_v49 = vpop.f32.mrb[101].mxu1 }
 0x2e0   : > { %5493 = vst [vmem:[#allocation30_spill] sm:$0xff] %v4759_v49  ;;  %v1835_v54 = vmax.f32 %v4757_v25, %v4759_v49 }
 0x2e2   : > { %1836 = vmax.xlane.f32.xlu0 %v1835_v54  ;;  %v4763_v61 = vpop.f32.mrb[102].mxu1 }
 0x2e3   : > { %5494 = vst [vmem:[#allocation31_spill] sm:$0xff] %v4763_v61  ;;  %v4765_v2 = vpop.f32.mrb[103].mxu1 }
 0x2e4   : > { %5495 = vst [vmem:[#allocation33_spill] sm:$0xff] %v4765_v2  ;;  %v1838_v10 = vmax.f32 %v4763_v61, %v4765_v2  ;;  %v3168_v61 = vpop.f32.mrb[16].mxu0 }
 0x2e6   : > { %1839 = vmax.xlane.f32.xlu0 %v1838_v10  ;;  %v4769_v46 = vpop.f32.mrb[104].mxu1 }
 0x2e7   : > { %5496 = vst [vmem:[#allocation9_spill] sm:$0xff] %v4769_v46  ;;  %v4771_v55 = vpop.f32.mrb[105].mxu1 }
 0x2e8   : > { %5497 = vst [vmem:[#allocation10_spill] sm:$0xff] %v4771_v55  ;;  %v1841_v34 = vmax.f32 %v4769_v46, %v4771_v55  ;;  %v1148_v55 = vpop.f32.mrb[17].mxu0 }
 0x2ea   : > { %1842 = vmax.xlane.f32.xlu0 %v1841_v34  ;;  %v4775_v29 = vpop.f32.mrb[106].mxu1  ;;  %v4790_v34 = vld [vmem:[%s5363_s7] ss:$0 sm:$0xff] }
 0x2eb   : > { %5498 = vst [vmem:[#allocation11_spill] sm:$0xff] %v4775_v29  ;;  %v4777_v5 = vpop.f32.mrb[107].mxu1 }
 0x2ec   : > { %5499 = vst [vmem:[#allocation12_spill] sm:$0xff] %v4777_v5  ;;  %v1844_v22 = vmax.f32 %v4775_v29, %v4777_v5  ;;  %v1154_v5 = vadd.f32 %v3168_v61, %v4790_v34 }
 0x2ee   : > { %1845 = vmax.xlane.f32.xlu0 %v1844_v22  ;;  %v4781_v54 = vpop.f32.mrb[108].mxu1  ;;  %v1149_v22 = vadd.f32 %v4790_v34, %v1148_v55 }
 0x2ef   : > { %5500 = vst [vmem:[#allocation13_spill] sm:$0xff] %v4781_v54  ;;  %v4783_v2 = vpop.f32.mrb[109].mxu1 }
 0x2f0   : > { %5501 = vst [vmem:[#allocation14_spill] sm:$0xff] %v4783_v2  ;;  %v1847_v10 = vmax.f32 %v4781_v54, %v4783_v2  ;;  %v3287_v2 = vpack.c.bf16 %v1154_v5, %v1149_v22  ;;  %v3171_v54 = vpop.f32.mrb[18].mxu0 }
 0x2f1   : > { %v1164_v25 = vadd.f32 %v3171_v54, %v4790_v34  ;;  %v1158_v16 = vpop.f32.mrb[19].mxu0 }
 0x2f2   : > { %1848 = vmax.xlane.f32.xlu0 %v1847_v10  ;;  %v4792_v46 = vpop.f32.mrb[110].mxu1  ;;  %v1159_v10 = vadd.f32 %v4790_v34, %v1158_v16  ;;  %3288 = vmatpush1.bf16.msra.mxu0 %v3287_v2  ;;  %v3174_v55 = vpop.f32.mrb[20].mxu0 }
 0x2f3   : > { %5502 = vst [vmem:[#allocation15_spill] sm:$0xff] %v4792_v46  ;;  %v4796_v29 = vpop.f32.mrb[111].mxu1  ;;  %3289 = vmatprep.subr.bf16.mxu0 %v3746_v19  ;;  %v1174_v36 = vadd.f32 %v3174_v55, %v4790_v34  ;;  %v1168_v28 = vpop.f32.mrb[21].mxu0 }
 0x2f4   : > { %5503 = vst [vmem:[#allocation16_spill] sm:$0xff] %v4796_v29  ;;  %v1850_v49 = vmax.f32 %v4792_v46, %v4796_v29  ;;  %v3290_v61 = vpack.c.bf16 %v1164_v25, %v1159_v10  ;;  %v1169_v5 = vadd.f32 %v4790_v34, %v1168_v28  ;;  %v3177_v22 = vpop.f32.mrb[22].mxu0 }
 0x2f5   : > { %v1184_v29 = vadd.f32 %v3177_v22, %v4790_v34 }
 0x2f6   : > { %1851 = vmax.xlane.f32.xlu0 %v1850_v49  ;;  %3291 = vmatpush1.bf16.msra.mxu0 %v3290_v61  ;;  %v3293_v54 = vpack.c.bf16 %v1174_v36, %v1169_v5  ;;  %v1178_v49 = vpop.f32.mrb[23].mxu0 }
 0x2f7   : > { %3292 = vmatprep.subr.bf16.mxu0 %v3746_v19  ;;  %v1179_v16 = vadd.f32 %v4790_v34, %v1178_v49  ;;  %v3180_v2 = vpop.f32.mrb[24].mxu0 }
 0x2f8   : > { %v1194_v10 = vadd.f32 %v3180_v2, %v4790_v34  ;;  %v1188_v55 = vpop.f32.mrb[25].mxu0 }
 0x2f9   : > { %v3296_v25 = vpack.c.bf16 %v1184_v29, %v1179_v16  ;;  %v1189_v28 = vadd.f32 %v4790_v34, %v1188_v55  ;;  %v3183_v61 = vpop.f32.mrb[26].mxu0 }
 0x2fa   : > { %3294 = vmatpush1.bf16.msra.mxu0 %v3293_v54  ;;  %v1204_v5 = vadd.f32 %v3183_v61, %v4790_v34  ;;  %v1198_v22 = vpop.f32.mrb[27].mxu0 }
 0x2fb   : > { %3295 = vmatprep.subr.bf16.mxu0 %v3746_v19  ;;  %v3299_v36 = vpack.c.bf16 %v1194_v10, %v1189_v28  ;;  %v1199_v49 = vadd.f32 %v4790_v34, %v1198_v22  ;;  %v3186_v55 = vpop.f32.mrb[28].mxu0 }
 0x2fc   : > { %v1208_v46 = vpop.f32.mrb[29].mxu0 }
 0x2fd   : > { %v3302_v2 = vpack.c.bf16 %v1204_v5, %v1199_v49  ;;  %v1209_v61 = vadd.f32 %v4790_v34, %v1208_v46  ;;  %v3189_v31 = vpop.f32.mrb[30].mxu0 }
 0x2fe   : > { %3297 = vmatpush1.bf16.msra.mxu0 %v3296_v25  ;;  %v1214_v25 = vadd.f32 %v3186_v55, %v4790_v34  ;;  %v1218_v48 = vpop.f32.mrb[31].mxu0 }
 0x2ff   : > { %3298 = vmatprep.subr.bf16.mxu0 %v3746_v19  ;;  %v1219_v49 = vadd.f32 %v4790_v34, %v1218_v48  ;;  %v3192_v46 = vpop.f32.mrb[32].mxu0 }
 0x300   : > { %v3305_v5 = vpack.c.bf16 %v1214_v25, %v1209_v61  ;;  %v1228_v55 = vpop.f32.mrb[33].mxu0 }
 0x301   : > { %v1229_v25 = vadd.f32 %v4790_v34, %v1228_v55  ;;  %v3195_v61 = vpop.f32.mrb[34].mxu0 }
 0x302   : > { %3300 = vmatpush1.bf16.msra.mxu0 %v3299_v36  ;;  %v1224_v36 = vadd.f32 %v3189_v31, %v4790_v34  ;;  %v1234_v31 = vadd.f32 %v3192_v46, %v4790_v34 }
 0x303   : > { %3301 = vmatprep.subr.bf16.mxu0 %v3746_v19 }
 0x306   : > { %3303 = vmatpush1.bf16.msra.mxu0 %v3302_v2  ;;  %v3308_v2 = vpack.c.bf16 %v1224_v36, %v1219_v49  ;;  %v1244_v36 = vadd.f32 %v3195_v61, %v4790_v34 }
 0x307   : > { %v1759_v54 = vpop.xlane.xlu0 %1758  ;;  %3304 = vmatprep.subr.bf16.mxu0 %v3746_v19 }
 0x308   : > { %v1853_v29 = vsub.f32 %v4601_v57, %v1759_v54  ;;  %v1854_v16 = vsub.f32 %v4603_v60, %v1759_v54 }
 0x30a   : > { %v1917_v10 = vmul.f32 1.442695, %v1853_v29  ;;  %v1919_v28 = vmul.f32 1.442695, %v1854_v16  ;;  %3306 = vmatpush1.bf16.msra.mxu0 %v3305_v5 }
 0x30b   : > { %v1762_v22 = vpop.xlane.xlu0 %1761  ;;  %3307 = vmatprep.subr.bf16.mxu0 %v3746_v19 }
 0x30c   : > { %3405 = vpow2.f32 %v1917_v10  ;;  %v1855_v57 = vsub.f32 %v4607_v3, %v1762_v22  ;;  %v1856_v60 = vsub.f32 %v4609_v11, %v1762_v22 }
 0x30d   : > { %3407 = vpow2.f32 %v1919_v28  ;;  %v3311_v28 = vpack.c.bf16 %v1234_v31, %v1229_v25 }
 0x30e   : > { %v1921_v54 = vmul.f32 1.442695, %v1855_v57  ;;  %v1923_v29 = vmul.f32 1.442695, %v1856_v60  ;;  %3309 = vmatpush1.bf16.msra.mxu0 %v3308_v2  ;;  %v1238_v57 = vpop.f32.mrb[35].mxu0 }
 0x30f   : > { %v1765_v16 = vpop.xlane.xlu1 %1764  ;;  %3310 = vmatprep.subr.bf16.mxu0 %v3746_v19  ;;  %v3198_v46 = vpop.f32.mrb[36].mxu0 }
 0x310   : > { %3409 = vpow2.f32 %v1921_v54  ;;  %v1857_v3 = vsub.f32 %v4613_v53, %v1765_v16  ;;  %v1858_v11 = vsub.f32 %v4615_v58, %v1765_v16  ;;  %v1239_v58 = vadd.f32 %v4790_v34, %v1238_v57  ;;  %v1248_v55 = vpop.f32.mrb[37].mxu0 }
 0x311   : > { %3411 = vpow2.f32 %v1923_v29  ;;  %v1254_v31 = vadd.f32 %v3198_v46, %v4790_v34  ;;  %v1249_v25 = vadd.f32 %v4790_v34, %v1248_v55 }
 0x312   : > { %v1925_v48 = vmul.f32 1.442695, %v1857_v3  ;;  %v1927_v10 = vmul.f32 1.442695, %v1858_v11  ;;  %v3314_v29 = vpack.c.bf16 %v1244_v36, %v1239_v58  ;;  %3312 = vmatpush1.bf16.msra.mxu0 %v3311_v28  ;;  %v3201_v11 = vpop.f32.mrb[38].mxu0 }
 0x313   : > { %v1768_v22 = vpop.xlane.xlu1 %1767  ;;  %3313 = vmatprep.subr.bf16.mxu0 %v3746_v19 }
 0x314   : > { %3413 = vpow2.f32 %v1925_v48  ;;  %v1859_v60 = vsub.f32 %v4619_v26, %v1768_v22  ;;  %v1860_v53 = vsub.f32 %v4621_v12, %v1768_v22  ;;  %v1264_v48 = vadd.f32 %v3201_v11, %v4790_v34 }
 0x315   : > { %3415 = vpow2.f32 %v1927_v10  ;;  %v1258_v10 = vpop.f32.mrb[39].mxu0 }
 0x316   : > { %v4835_v5 = vpop.eup %3405  ;;  %v1929_v49 = vmul.f32 1.442695, %v1859_v60  ;;  %v1931_v54 = vmul.f32 1.442695, %v1860_v53  ;;  %3315 = vmatpush1.bf16.msra.mxu0 %v3314_v29  ;;  %v3204_v36 = vpop.f32.mrb[40].mxu0  ;;  %v3317_v60 = vpack.c.bf16 %v1254_v31, %v1249_v25 }
 0x317   : > { %v4837_v16 = vpop.eup %3407  ;;  %v1771_v2 = vpop.xlane.xlu0 %1770  ;;  %3316 = vmatprep.subr.bf16.mxu0 %v3746_v19  ;;  %v1274_v53 = vadd.f32 %v3204_v36, %v4790_v34 }
 0x318   : > { %3417 = vpow2.f32 %v1929_v49  ;;  %v1861_v26 = vsub.f32 %v4625_v27, %v1771_v2  ;;  %v1862_v12 = vsub.f32 %v4627_v44, %v1771_v2  ;;  %v2045_v3 = vadd.f32 %v4837_v16, %v4835_v5  ;;  %v1268_v58 = vpop.f32.mrb[41].mxu0 }
 0x319   : > { %3419 = vpow2.f32 %v1931_v54  ;;  %v1259_v27 = vadd.f32 %v4790_v34, %v1258_v10  ;;  %v3207_v46 = vpop.f32.mrb[42].mxu0  ;;  %v1269_v55 = vadd.f32 %v4790_v34, %v1268_v58 }
 0x31a   : > { %v4847_v28 = vpop.eup %3409  ;;  %v1933_v61 = vmul.f32 1.442695, %v1861_v26  ;;  %v1935_v22 = vmul.f32 1.442695, %v1862_v12  ;;  %2046 = vadd.xlane.f32.xlu1 %v2045_v3  ;;  %v1284_v31 = vadd.f32 %v3207_v46, %v4790_v34  ;;  %v1278_v26 = vpop.f32.mrb[43].mxu0  ;;  %3318 = vmatpush1.bf16.msra.mxu0 %v3317_v60 }
 0x31b   : > { %v4850_v44 = vpop.eup %3411  ;;  %v1774_v57 = vpop.xlane.xlu1 %1773  ;;  %v3320_v2 = vpack.c.bf16 %v1264_v48, %v1259_v27  ;;  %v3323_v10 = vpack.c.bf16 %v1274_v53, %v1269_v55  ;;  %3319 = vmatprep.subr.bf16.mxu0 %v3746_v19 }
 0x31c   : > { %3421 = vpow2.f32 %v1933_v61  ;;  %v1863_v49 = vsub.f32 %v4631_v37, %v1774_v57  ;;  %v1864_v54 = vsub.f32 %v4633_v35, %v1774_v57  ;;  %v2048_v29 = vadd.f32 %v4850_v44, %v4847_v28 }
 0x31d   : > { %3423 = vpow2.f32 %v1935_v22  ;;  %v1279_v37 = vadd.f32 %v4790_v34, %v1278_v26  ;;  %v3210_v26 = vpop.f32.mrb[44].mxu0 }
 0x31e   : > { %v4860_v12 = vpop.eup %3413  ;;  %v1937_v3 = vmul.f32 1.442695, %v1863_v49  ;;  %v1939_v11 = vmul.f32 1.442695, %v1864_v54  ;;  %2049 = vadd.xlane.f32.xlu1 %v2048_v29  ;;  %3321 = vmatpush1.bf16.msra.mxu0 %v3320_v2 }
 0x31f   : > { %v4863_v35 = vpop.eup %3415  ;;  %v1777_v25 = vpop.xlane.xlu0 %1776  ;;  %v3326_v27 = vpack.c.bf16 %v1284_v31, %v1279_v37  ;;  %3322 = vmatprep.subr.bf16.mxu0 %v3746_v19 }
 0x320   : > { %3425 = vpow2.f32 %v1937_v3  ;;  %v1865_v48 = vsub.f32 %v4637_v7, %v1777_v25  ;;  %v1866_v61 = vsub.f32 %v4639_v40, %v1777_v25  ;;  %v2051_v22 = vadd.f32 %v4863_v35, %v4860_v12  ;;  %v1288_v3 = vpop.f32.mrb[45].mxu0 }
 0x321   : > { %3427 = vpow2.f32 %v1939_v11 }
 0x322   : > { %v4870_v36 = vpop.eup %3417  ;;  %v1941_v57 = vmul.f32 1.442695, %v1865_v48  ;;  %v1943_v60 = vmul.f32 1.442695, %v1866_v61  ;;  %2052 = vadd.xlane.f32.xlu1 %v2051_v22  ;;  %3324 = vmatpush1.bf16.msra.mxu0 %v3323_v10  ;;  %v1294_v10 = vadd.f32 %v3210_v26, %v4790_v34  ;;  %v1289_v48 = vadd.f32 %v4790_v34, %v1288_v3 }
 0x323   : > { %v4872_v58 = vpop.eup %3419  ;;  %v1780_v53 = vpop.xlane.xlu1 %1779  ;;  %3325 = vmatprep.subr.bf16.mxu0 %v3746_v19 }
 0x324   : > { %3429 = vpow2.f32 %v1941_v57  ;;  %v1867_v7 = vsub.f32 %v4643_v39, %v1780_v53  ;;  %v1868_v40 = vsub.f32 %v4645_v32, %v1780_v53  ;;  %v2054_v49 = vadd.f32 %v4872_v58, %v4870_v36 }
 0x325   : > { %3431 = vpow2.f32 %v1943_v60  ;;  %v3213_v60 = vpop.f32.mrb[46].mxu0  ;;  %v3329_v53 = vpack.c.bf16 %v1294_v10, %v1289_v48 }
 0x326   : > { %v4879_v54 = vpop.eup %3421  ;;  %v1945_v29 = vmul.f32 1.442695, %v1867_v7  ;;  %v1947_v46 = vmul.f32 1.442695, %v1868_v40  ;;  %2055 = vadd.xlane.f32.xlu1 %v2054_v49  ;;  %3327 = vmatpush1.bf16.msra.mxu0 %v3326_v27  ;;  %v1298_v7 = vpop.f32.mrb[47].mxu0 }
 0x327   : > { %v4881_v2 = vpop.eup %3423  ;;  %v1783_v55 = vpop.xlane.xlu0 %1782  ;;  %3328 = vmatprep.subr.bf16.mxu0 %v3746_v19 }
 0x328   : > { %3433 = vpow2.f32 %v1945_v29  ;;  %v1869_v39 = vsub.f32 %v4649_v33, %v1783_v55  ;;  %v1870_v32 = vsub.f32 %v4651_v43, %v1783_v55  ;;  %v2057_v31 = vadd.f32 %v4881_v2, %v4879_v54 }
 0x329   : > { %3435 = vpow2.f32 %v1947_v46  ;;  %v1304_v29 = vadd.f32 %v3213_v60, %v4790_v34  ;;  %v1299_v46 = vadd.f32 %v4790_v34, %v1298_v7 }
 0x32a   : > { %v4888_v11 = vpop.eup %3425  ;;  %v1949_v37 = vmul.f32 1.442695, %v1869_v39  ;;  %v1951_v25 = vmul.f32 1.442695, %v1870_v32  ;;  %2058 = vadd.xlane.f32.xlu1 %v2057_v31  ;;  %3330 = vmatpush1.bf16.msra.mxu0 %v3329_v53 }
 0x32b   : > { %v4892_v61 = vpop.eup %3427  ;;  %v1786_v33 = vpop.xlane.xlu1 %1785  ;;  %3331 = vmatprep.subr.bf16.mxu0 %v3746_v19  ;;  %v3332_v31 = vpack.c.bf16 %v1304_v29, %v1299_v46 }
 0x32c   : > { %3437 = vpow2.f32 %v1949_v37  ;;  %v1871_v43 = vsub.f32 %v4655_v6, %v1786_v33  ;;  %v1872_v22 = vsub.f32 %v4657_v9, %v1786_v33  ;;  %v2060_v57 = vadd.f32 %v4892_v61, %v4888_v11 }
 0x32d   : > { %3439 = vpow2.f32 %v1951_v25 }
 0x32e   : > { %v4899_v40 = vpop.eup %3429  ;;  %v1953_v27 = vmul.f32 1.442695, %v1871_v43  ;;  %v1955_v49 = vmul.f32 1.442695, %v1872_v22  ;;  %2061 = vadd.xlane.f32.xlu1 %v2060_v57  ;;  %3333 = vmatpush1.bf16.msra.mxu0 %v3332_v31 }
 0x32f   : > { %v4903_v55 = vpop.eup %3431  ;;  %v1789_v6 = vpop.xlane.xlu0 %1788 }
 0x330   : > { %3441 = vpow2.f32 %v1953_v27  ;;  %v1873_v9 = vsub.f32 %v4661_v62, %v1789_v6  ;;  %v1874_v39 = vsub.f32 %v4663_v45, %v1789_v6  ;;  %v2063_v32 = vadd.f32 %v4903_v55, %v4899_v40 }
 0x331   : > { %3443 = vpow2.f32 %v1955_v49 }
 0x332   : > { %v4910_v26 = vpop.eup %3433  ;;  %v1957_v3 = vmul.f32 1.442695, %v1873_v9  ;;  %v1959_v34 = vmul.f32 1.442695, %v1874_v39  ;;  %2064 = vadd.xlane.f32.xlu1 %v2063_v32 }
 0x333   : > { %v4912_v37 = vpop.eup %3435  ;;  %v1792_v25 = vpop.xlane.xlu1 %1791 }
 0x334   : > { %3445 = vpow2.f32 %v1957_v3  ;;  %v1875_v62 = vsub.f32 %v4667_v14, %v1792_v25  ;;  %v1876_v45 = vsub.f32 %v4669_v17, %v1792_v25  ;;  %v2066_v10 = vadd.f32 %v4912_v37, %v4910_v26 }
 0x335   : > { %3447 = vpow2.f32 %v1959_v34 }
 0x336   : > { %v4918_v19 = vpop.eup %3437  ;;  %v1961_v48 = vmul.f32 1.442695, %v1875_v62  ;;  %v1963_v33 = vmul.f32 1.442695, %v1876_v45  ;;  %2067 = vadd.xlane.f32.xlu1 %v2066_v10 }
 0x337   : > { %v4920_v43 = vpop.eup %3439  ;;  %v1795_v22 = vpop.xlane.xlu0 %1794 }
 0x338   : > { %3449 = vpow2.f32 %v1961_v48  ;;  %v1877_v57 = vsub.f32 %v4673_v21, %v1795_v22  ;;  %v1878_v60 = vsub.f32 %v4675_v23, %v1795_v22  ;;  %v2069_v14 = vadd.f32 %v4920_v43, %v4918_v19 }
 0x339   : > { %3451 = vpow2.f32 %v1963_v33 }
 0x33a   : > { %v4926_v17 = vpop.eup %3441  ;;  %v1965_v53 = vmul.f32 1.442695, %v1877_v57  ;;  %v1967_v7 = vmul.f32 1.442695, %v1878_v60  ;;  %2070 = vadd.xlane.f32.xlu1 %v2069_v14 }
 0x33b   : > { %v4928_v27 = vpop.eup %3443  ;;  %v1798_v49 = vpop.xlane.xlu1 %1797 }
 0x33c   : > { %3453 = vpow2.f32 %v1965_v53  ;;  %v1879_v29 = vsub.f32 %v4679_v18, %v1798_v49  ;;  %v1880_v46 = vsub.f32 %v4681_v20, %v1798_v49  ;;  %v2072_v21 = vadd.f32 %v4928_v27, %v4926_v17 }
 0x33d   : > { %3455 = vpow2.f32 %v1967_v7 }
 0x33e   : > { %v4934_v23 = vpop.eup %3445  ;;  %v1969_v6 = vmul.f32 1.442695, %v1879_v29  ;;  %v1971_v9 = vmul.f32 1.442695, %v1880_v46  ;;  %2073 = vadd.xlane.f32.xlu1 %v2072_v21 }
 0x33f   : > { %v4936_v39 = vpop.eup %3447  ;;  %v1801_v32 = vpop.xlane.xlu0 %1800 }
 0x340   : > { %3457 = vpow2.f32 %v1969_v6  ;;  %v1881_v31 = vsub.f32 %v4685_v24, %v1801_v32  ;;  %v1882_v3 = vsub.f32 %v4687_v41, %v1801_v32  ;;  %v2075_v18 = vadd.f32 %v4936_v39, %v4934_v23 }
 0x341   : > { %3459 = vpow2.f32 %v1971_v9 }
 0x342   : > { %v4942_v20 = vpop.eup %3449  ;;  %v1973_v34 = vmul.f32 1.442695, %v1881_v31  ;;  %v1975_v25 = vmul.f32 1.442695, %v1882_v3  ;;  %2076 = vadd.xlane.f32.xlu0 %v2075_v18 }
 0x343   : > { %v4944_v62 = vpop.eup %3451  ;;  %v1804_v45 = vpop.xlane.xlu1 %1803 }
 0x344   : > { %3461 = vpow2.f32 %v1973_v34  ;;  %v1883_v10 = vsub.f32 %v4691_v42, %v1804_v45  ;;  %v1884_v48 = vsub.f32 %v4693_v47, %v1804_v45  ;;  %v2078_v24 = vadd.f32 %v4944_v62, %v4942_v20 }
 0x345   : > { %3463 = vpow2.f32 %v1975_v25 }
 0x346   : > { %v4950_v41 = vpop.eup %3453  ;;  %v1977_v33 = vmul.f32 1.442695, %v1883_v10  ;;  %v1979_v22 = vmul.f32 1.442695, %v1884_v48  ;;  %2079 = vadd.xlane.f32.xlu1 %v2078_v24 }
 0x347   : > { %v4952_v57 = vpop.eup %3455  ;;  %v1807_v60 = vpop.xlane.xlu0 %1806 }
 0x348   : > { %3465 = vpow2.f32 %v1977_v33  ;;  %v1885_v14 = vsub.f32 %v4697_v51, %v1807_v60  ;;  %v1886_v53 = vsub.f32 %v4699_v52, %v1807_v60  ;;  %v2081_v42 = vadd.f32 %v4952_v57, %v4950_v41 }
 0x349   : > { %3467 = vpow2.f32 %v1979_v22 }
 0x34a   : > { %v4958_v47 = vpop.eup %3457  ;;  %v1981_v7 = vmul.f32 1.442695, %v1885_v14  ;;  %v1983_v49 = vmul.f32 1.442695, %v1886_v53  ;;  %2082 = vadd.xlane.f32.xlu0 %v2081_v42 }
 0x34b   : > { %v4960_v29 = vpop.eup %3459  ;;  %v1810_v46 = vpop.xlane.xlu1 %1809 }
 0x34c   : > { %3469 = vpow2.f32 %v1981_v7  ;;  %v1887_v21 = vsub.f32 %v4703_v56, %v1810_v46  ;;  %v1888_v6 = vsub.f32 %v4705_v59, %v1810_v46  ;;  %v2084_v51 = vadd.f32 %v4960_v29, %v4958_v47 }
 0x34d   : > { %3471 = vpow2.f32 %v1983_v49 }
 0x34e   : > { %v4966_v52 = vpop.eup %3461  ;;  %v1985_v9 = vmul.f32 1.442695, %v1887_v21  ;;  %v1987_v32 = vmul.f32 1.442695, %v1888_v6  ;;  %2085 = vadd.xlane.f32.xlu1 %v2084_v51 }
 0x34f   : > { %v4968_v31 = vpop.eup %3463  ;;  %v1813_v3 = vpop.xlane.xlu0 %1812 }
 0x350   : > { %3473 = vpow2.f32 %v1985_v9  ;;  %v1889_v18 = vsub.f32 %v4709_v63, %v1813_v3  ;;  %v1890_v34 = vsub.f32 %v4711_v0, %v1813_v3  ;;  %v2087_v56 = vadd.f32 %v4968_v31, %v4966_v52 }
 0x351   : > { %3475 = vpow2.f32 %v1987_v32 }
 0x352   : > { %v4974_v59 = vpop.eup %3465  ;;  %v1989_v25 = vmul.f32 1.442695, %v1889_v18  ;;  %v1991_v45 = vmul.f32 1.442695, %v1890_v34  ;;  %2088 = vadd.xlane.f32.xlu0 %v2087_v56 }
 0x353   : > { %v4976_v10 = vpop.eup %3467  ;;  %v1816_v48 = vpop.xlane.xlu1 %1815 }
 0x354   : > { %3477 = vpow2.f32 %v1989_v25  ;;  %v1891_v24 = vsub.f32 %v4715_v4, %v1816_v48  ;;  %v1892_v33 = vsub.f32 %v4717_v8, %v1816_v48  ;;  %v2090_v63 = vadd.f32 %v4976_v10, %v4974_v59 }
 0x355   : > { %3479 = vpow2.f32 %v1991_v45 }
 0x356   : > { %v4982_v0 = vpop.eup %3469  ;;  %v1993_v22 = vmul.f32 1.442695, %v1891_v24  ;;  %v1995_v60 = vmul.f32 1.442695, %v1892_v33  ;;  %2091 = vadd.xlane.f32.xlu1 %v2090_v63  ;;  %v5504_v63 = vld [vmem:[#allocation34_spill] sm:$0xff] }
 0x357   : > { %v4984_v14 = vpop.eup %3471  ;;  %v1819_v53 = vpop.xlane.xlu0 %1818 }
 0x358   : > { %3481 = vpow2.f32 %v1993_v22  ;;  %v1893_v42 = vsub.f32 %v4721_v13, %v1819_v53  ;;  %v1894_v7 = vsub.f32 %v4723_v15, %v1819_v53  ;;  %v2093_v4 = vadd.f32 %v4984_v14, %v4982_v0 }
 0x359   : > { %3483 = vpow2.f32 %v1995_v60  ;;  %v5505_v60 = vld [vmem:[#allocation18_spill] sm:$0xff] }
 0x35a   : > { %v4990_v8 = vpop.eup %3473  ;;  %v1997_v49 = vmul.f32 1.442695, %v1893_v42  ;;  %v1999_v46 = vmul.f32 1.442695, %v1894_v7  ;;  %2094 = vadd.xlane.f32.xlu0 %v2093_v4 }
 0x35b   : > { %v4992_v21 = vpop.eup %3475  ;;  %v1822_v6 = vpop.xlane.xlu1 %1821 }
 0x35c   : > { %3485 = vpow2.f32 %v1997_v49  ;;  %v1895_v51 = vsub.f32 %v4727_v50, %v1822_v6  ;;  %v1896_v9 = vsub.f32 %v4729_v1, %v1822_v6  ;;  %v2096_v13 = vadd.f32 %v4992_v21, %v4990_v8 }
 0x35d   : > { %3487 = vpow2.f32 %v1999_v46  ;;  %v5506_v46 = vld [vmem:[#allocation19_spill] sm:$0xff] }
 0x35e   : > { %v4998_v15 = vpop.eup %3477  ;;  %v2001_v32 = vmul.f32 1.442695, %v1895_v51  ;;  %v2003_v3 = vmul.f32 1.442695, %v1896_v9  ;;  %2097 = vadd.xlane.f32.xlu1 %v2096_v13  ;;  %v5507_v51 = vld [vmem:[#allocation22_spill] sm:$0xff] }
 0x35f   : > { %v5000_v18 = vpop.eup %3479  ;;  %v1825_v34 = vpop.xlane.xlu0 %1824 }
 0x360   : > { %3489 = vpow2.f32 %v2001_v32  ;;  %v1897_v56 = vsub.f32 %v4733_v38, %v1825_v34  ;;  %v1898_v25 = vsub.f32 %v4735_v30, %v1825_v34  ;;  %v2099_v50 = vadd.f32 %v5000_v18, %v4998_v15 }
 0x361   : > { %3491 = vpow2.f32 %v2003_v3 }
 0x362   : > { %v5006_v1 = vpop.eup %3481  ;;  %v2005_v45 = vmul.f32 1.442695, %v1897_v56  ;;  %v2007_v48 = vmul.f32 1.442695, %v1898_v25  ;;  %2100 = vadd.xlane.f32.xlu0 %v2099_v50  ;;  %v5508_v50 = vld [vmem:[#allocation23_spill] sm:$0xff] }
 0x363   : > { %v5008_v24 = vpop.eup %3483  ;;  %v1828_v33 = vpop.xlane.xlu0 %1827 }
 0x364   : > { %3493 = vpow2.f32 %v2005_v45  ;;  %v1899_v22 = vsub.f32 %v5504_v63, %v1828_v33  ;;  %v1900_v53 = vsub.f32 %v5505_v60, %v1828_v33  ;;  %v2102_v38 = vadd.f32 %v5008_v24, %v5006_v1 }
 0x365   : > { %3495 = vpow2.f32 %v2007_v48  ;;  %v5509_v48 = vld [vmem:[#allocation26_spill] sm:$0xff] }
 0x366   : > { %v5014_v30 = vpop.eup %3485  ;;  %v2009_v42 = vmul.f32 1.442695, %v1899_v22  ;;  %v2011_v7 = vmul.f32 1.442695, %v1900_v53  ;;  %2103 = vadd.xlane.f32.xlu1 %v2102_v38 }
 0x367   : > { %v5016_v4 = vpop.eup %3487  ;;  %v1831_v49 = vpop.xlane.xlu0 %1830 }
 0x368   : > { %3497 = vpow2.f32 %v2009_v42  ;;  %v1901_v6 = vsub.f32 %v5506_v46, %v1831_v49  ;;  %v1902_v9 = vsub.f32 %v5507_v51, %v1831_v49  ;;  %v2105_v13 = vadd.f32 %v5016_v4, %v5014_v30  ;;  %v5511_v46 = vld [vmem:[#allocation30_spill] sm:$0xff] }
 0x369   : > { %3499 = vpow2.f32 %v2011_v7  ;;  %v5510_v7 = vld [vmem:[#allocation27_spill] sm:$0xff] }
 0x36a   : > { %v5022_v32 = vpop.eup %3489  ;;  %v2013_v3 = vmul.f32 1.442695, %v1901_v6  ;;  %v2015_v34 = vmul.f32 1.442695, %v1902_v9  ;;  %2106 = vadd.xlane.f32.xlu0 %v2105_v13 }
 0x36b   : > { %v5024_v56 = vpop.eup %3491  ;;  %v1834_v25 = vpop.xlane.xlu0 %1833 }
 0x36c   : > { %3501 = vpow2.f32 %v2013_v3  ;;  %v1903_v45 = vsub.f32 %v5508_v50, %v1834_v25  ;;  %v1904_v33 = vsub.f32 %v5509_v48, %v1834_v25  ;;  %v2108_v63 = vadd.f32 %v5024_v56, %v5022_v32  ;;  %v5514_v50 = vld [vmem:[#allocation31_spill] sm:$0xff]  ;;  %v5515_v48 = vld [vmem:[#allocation33_spill] sm:$0xff] }
 0x36d   : > { %3503 = vpow2.f32 %v2015_v34 }
 0x36e   : > { %v5030_v22 = vpop.eup %3493  ;;  %v2017_v60 = vmul.f32 1.442695, %v1903_v45  ;;  %v2019_v53 = vmul.f32 1.442695, %v1904_v33  ;;  %2109 = vadd.xlane.f32.xlu1 %v2108_v63 }
 0x36f   : > { %v5032_v38 = vpop.eup %3495  ;;  %v1837_v42 = vpop.xlane.xlu0 %1836 }
 0x370   : > { %3505 = vpow2.f32 %v2017_v60  ;;  %v1905_v49 = vsub.f32 %v5510_v7, %v1837_v42  ;;  %v1906_v6 = vsub.f32 %v5511_v46, %v1837_v42  ;;  %v2111_v51 = vadd.f32 %v5032_v38, %v5030_v22  ;;  %v5518_v46 = vld [vmem:[#allocation9_spill] sm:$0xff] }
 0x371   : > { %3507 = vpow2.f32 %v2019_v53 }
 0x372   : > { %v5038_v9 = vpop.eup %3497  ;;  %v2021_v13 = vmul.f32 1.442695, %v1905_v49  ;;  %v2023_v3 = vmul.f32 1.442695, %v1906_v6  ;;  %2112 = vadd.xlane.f32.xlu0 %v2111_v51  ;;  %v5519_v51 = vld [vmem:[#allocation10_spill] sm:$0xff] }
 0x373   : > { %5512 = vst [vmem:[#allocation17_spill] sm:$0xff] %v5038_v9  ;;  %v5040_v34 = vpop.eup %3499  ;;  %v1840_v25 = vpop.xlane.xlu0 %1839 }
 0x374   : > { %5513 = vst [vmem:[#allocation20_spill] sm:$0xff] %v5040_v34  ;;  %3509 = vpow2.f32 %v2021_v13  ;;  %v1907_v45 = vsub.f32 %v5514_v50, %v1840_v25  ;;  %v1908_v33 = vsub.f32 %v5515_v48, %v1840_v25  ;;  %v2114_v63 = vadd.f32 %v5040_v34, %v5038_v9 }
 0x375   : > { %3511 = vpow2.f32 %v2023_v3 }
 0x376   : > { %v5046_v60 = vpop.eup %3501  ;;  %v2025_v53 = vmul.f32 1.442695, %v1907_v45  ;;  %v2027_v42 = vmul.f32 1.442695, %v1908_v33  ;;  %2115 = vadd.xlane.f32.xlu1 %v2114_v63  ;;  %v5522_v63 = vld [vmem:[#allocation11_spill] sm:$0xff] }
 0x377   : > { %5516 = vst [vmem:[#allocation21_spill] sm:$0xff] %v5046_v60  ;;  %v5048_v7 = vpop.eup %3503  ;;  %v1843_v49 = vpop.xlane.xlu0 %1842 }
 0x378   : > { %5517 = vst [vmem:[#allocation24_spill] sm:$0xff] %v5048_v7  ;;  %3513 = vpow2.f32 %v2025_v53  ;;  %v1909_v6 = vsub.f32 %v5518_v46, %v1843_v49  ;;  %v1910_v13 = vsub.f32 %v5519_v51, %v1843_v49  ;;  %v2117_v25 = vadd.f32 %v5048_v7, %v5046_v60  ;;  %v5523_v53 = vld [vmem:[#allocation12_spill] sm:$0xff] }
 0x379   : > { %3515 = vpow2.f32 %v2027_v42 }
 0x37a   : > { %v5054_v50 = vpop.eup %3505  ;;  %v2029_v3 = vmul.f32 1.442695, %v1909_v6  ;;  %v2031_v48 = vmul.f32 1.442695, %v1910_v13  ;;  %2118 = vadd.xlane.f32.xlu0 %v2117_v25  ;;  %v5524_v25 = vld [vmem:[#allocation13_spill] sm:$0xff] }
 0x37b   : > { %5520 = vst [vmem:[#allocation25_spill] sm:$0xff] %v5054_v50  ;;  %v5056_v45 = vpop.eup %3507  ;;  %v1846_v33 = vpop.xlane.xlu0 %1845 }
 0x37c   : > { %5521 = vst [vmem:[#allocation28_spill] sm:$0xff] %v5056_v45  ;;  %3517 = vpow2.f32 %v2029_v3  ;;  %v1911_v9 = vsub.f32 %v5522_v63, %v1846_v33  ;;  %v1912_v34 = vsub.f32 %v5523_v53, %v1846_v33  ;;  %v2120_v49 = vadd.f32 %v5056_v45, %v5054_v50  ;;  %v5525_v3 = vld [vmem:[#allocation14_spill] sm:$0xff] }
 0x37d   : > { %3519 = vpow2.f32 %v2031_v48 }
 0x37e   : > { %v5062_v46 = vpop.eup %3509  ;;  %v2033_v42 = vmul.f32 1.442695, %v1911_v9  ;;  %v2035_v51 = vmul.f32 1.442695, %v1912_v34  ;;  %2121 = vadd.xlane.f32.xlu1 %v2120_v49  ;;  %v5526_v49 = vld [vmem:[#allocation15_spill] sm:$0xff] }
 0x37f   : > { %v5064_v6 = vpop.eup %3511  ;;  %v1849_v13 = vpop.xlane.xlu0 %1848 }
 0x380   : > { %3521 = vpow2.f32 %v2033_v42  ;;  %v1913_v60 = vsub.f32 %v5524_v25, %v1849_v13  ;;  %v1914_v7 = vsub.f32 %v5525_v3, %v1849_v13  ;;  %v2123_v33 = vadd.f32 %v5064_v6, %v5062_v46  ;;  %v5527_v42 = vld [vmem:[#allocation16_spill] sm:$0xff] }
 0x381   : > { %3523 = vpow2.f32 %v2035_v51 }
 0x382   : > { %v5070_v63 = vpop.eup %3513  ;;  %v2037_v48 = vmul.f32 1.442695, %v1913_v60  ;;  %v2039_v53 = vmul.f32 1.442695, %v1914_v7  ;;  %2124 = vadd.xlane.f32.xlu0 %v2123_v33 }
 0x383   : > { %v5072_v9 = vpop.eup %3515  ;;  %v1852_v34 = vpop.xlane.xlu0 %1851 }
 0x384   : > { %3525 = vpow2.f32 %v2037_v48  ;;  %v1915_v50 = vsub.f32 %v5526_v49, %v1852_v34  ;;  %v1916_v45 = vsub.f32 %v5527_v42, %v1852_v34  ;;  %v2126_v13 = vadd.f32 %v5072_v9, %v5070_v63 }
 0x385   : > { %3527 = vpow2.f32 %v2039_v53 }
 0x386   : > { %v5078_v25 = vpop.eup %3517  ;;  %v2041_v51 = vmul.f32 1.442695, %v1915_v50  ;;  %v2043_v3 = vmul.f32 1.442695, %v1916_v45  ;;  %2127 = vadd.xlane.f32.xlu1 %v2126_v13 }
 0x387   : > { %v5080_v60 = vpop.eup %3519 }
 0x388   : > { %3529 = vpow2.f32 %v2041_v51  ;;  %v2129_v7 = vadd.f32 %v5080_v60, %v5078_v25 }
 0x389   : > { %3531 = vpow2.f32 %v2043_v3 }
 0x38a   : > { %v5084_v33 = vpop.eup %3521  ;;  %2130 = vadd.xlane.f32.xlu0 %v2129_v7 }
 0x38b   : > { %5528 = vst [vmem:[#allocation29_spill] sm:$0xff] %v5084_v33  ;;  %v5086_v48 = vpop.eup %3523 }
 0x38c   : > { %5529 = vst [vmem:[#allocation32_spill] sm:$0xff] %v5086_v48  ;;  %v2132_v53 = vadd.f32 %v5086_v48, %v5084_v33 }
 0x38e   : > { %v5090_v34 = vpop.eup %3525  ;;  %2133 = vadd.xlane.f32.xlu1 %v2132_v53 }
 0x38f   : > { %5530 = vst [vmem:[#allocation34_spill] sm:$0xff] %v5090_v34  ;;  %v5092_v50 = vpop.eup %3527 }
 0x390   : > { %5531 = vst [vmem:[#allocation18_spill] sm:$0xff] %v5092_v50  ;;  %v2135_v45 = vadd.f32 %v5092_v50, %v5090_v34 }
 0x392   : > { %v5096_v49 = vpop.eup %3529  ;;  %2136 = vadd.xlane.f32.xlu0 %v2135_v45 }
 0x393   : > { %5532 = vst [vmem:[#allocation19_spill] sm:$0xff] %v5096_v49  ;;  %v5098_v42 = vpop.eup %3531 }
 0x394   : > { %v2138_v13 = vadd.f32 %v5098_v42, %v5096_v49 }
 0x396   : > { %2139 = vadd.xlane.f32.xlu1 %v2138_v13 }
 0x3a7   : > { %v2047_v51 = vpop.xlane.xlu1 %2046 }
 0x3a8   : > { %3533 = vrcp.f32 %v2047_v51 }
 0x3ab   : > { %v2050_v3 = vpop.xlane.xlu1 %2049 }
 0x3ac   : > { %3535 = vrcp.f32 %v2050_v3 }
 0x3af   : > { %v2053_v7 = vpop.xlane.xlu1 %2052 }
 0x3b0   : > { %3537 = vrcp.f32 %v2053_v7 }
 0x3b2   : > { %v3534_v53 = vpop.eup %3533 }
 0x3b3   : > { %v2142_v33 = vmul.f32 %v3534_v53, %v4835_v5  ;;  %v2056_v48 = vpop.xlane.xlu1 %2055  ;;  %v2143_v34 = vmul.f32 %v3534_v53, %v4837_v16 }
 0x3b4   : > { %3539 = vrcp.f32 %v2056_v48 }
 0x3b5   : > { %2301 = vmatprep.mubr.f32.mxu0 %v2143_v34 }
 0x3b6   : > { %v3536_v45 = vpop.eup %3535  ;;  %2302 = vmatmul.mubr.f32.vlgmr.msra.gmra.mrb[48].mxu0 %v2142_v33 }
 0x3b7   : > { %v2059_v50 = vpop.xlane.xlu1 %2058  ;;  %v2146_v49 = vmul.f32 %v3536_v45, %v4850_v44  ;;  %v2145_v13 = vmul.f32 %v3536_v45, %v4847_v28 }
 0x3b8   : > { %3541 = vrcp.f32 %v2059_v50 }
 0x3b9   : > { %2306 = vmatprep.mubr.f32.mxu0 %v2146_v49 }
 0x3ba   : > { %v3538_v51 = vpop.eup %3537  ;;  %2307 = vmatmul.mubr.f32.gmra.mrb[50].mxu0 %v2145_v13 }
 0x3bb   : > { %v2062_v3 = vpop.xlane.xlu1 %2061  ;;  %v2149_v7 = vmul.f32 %v3538_v51, %v4863_v35  ;;  %v2148_v5 = vmul.f32 %v3538_v51, %v4860_v12 }
 0x3bc   : > { %3543 = vrcp.f32 %v2062_v3 }
 0x3bd   : > { %2311 = vmatprep.mubr.f32.mxu0 %v2149_v7 }
 0x3be   : > { %v3540_v16 = vpop.eup %3539  ;;  %2312 = vmatmul.mubr.f32.gmra.mrb[52].mxu0 %v2148_v5 }
 0x3bf   : > { %v2065_v48 = vpop.xlane.xlu1 %2064  ;;  %v2152_v33 = vmul.f32 %v3540_v16, %v4872_v58  ;;  %v2151_v44 = vmul.f32 %v3540_v16, %v4870_v36 }
 0x3c0   : > { %3545 = vrcp.f32 %v2065_v48 }
 0x3c1   : > { %2316 = vmatprep.mubr.f32.mxu0 %v2152_v33 }
 0x3c2   : > { %v3542_v28 = vpop.eup %3541  ;;  %2317 = vmatmul.mubr.f32.gmra.mrb[54].mxu0 %v2151_v44 }
 0x3c3   : > { %v2068_v34 = vpop.xlane.xlu1 %2067  ;;  %v2155_v50 = vmul.f32 %v3542_v28, %v4881_v2  ;;  %v2154_v35 = vmul.f32 %v3542_v28, %v4879_v54 }
 0x3c4   : > { %3547 = vrcp.f32 %v2068_v34 }
 0x3c5   : > { %2321 = vmatprep.mubr.f32.mxu0 %v2155_v50 }
 0x3c6   : > { %v3544_v12 = vpop.eup %3543  ;;  %2322 = vmatmul.mubr.f32.gmra.mrb[56].mxu0 %v2154_v35 }
 0x3c7   : > { %v2071_v49 = vpop.xlane.xlu1 %2070  ;;  %v2158_v53 = vmul.f32 %v3544_v12, %v4892_v61  ;;  %v2157_v58 = vmul.f32 %v3544_v12, %v4888_v11 }
 0x3c8   : > { %3549 = vrcp.f32 %v2071_v49 }
 0x3c9   : > { %2326 = vmatprep.mubr.f32.mxu0 %v2158_v53 }
 0x3ca   : > { %v3546_v36 = vpop.eup %3545  ;;  %2327 = vmatmul.mubr.f32.gmra.mrb[58].mxu0 %v2157_v58 }
 0x3cb   : > { %v2074_v45 = vpop.xlane.xlu1 %2073  ;;  %v2161_v13 = vmul.f32 %v3546_v36, %v4903_v55  ;;  %v2160_v2 = vmul.f32 %v3546_v36, %v4899_v40 }
 0x3cc   : > { %3551 = vrcp.f32 %v2074_v45 }
 0x3cd   : > { %2331 = vmatprep.mubr.f32.mxu0 %v2161_v13 }
 0x3ce   : > { %v3548_v54 = vpop.eup %3547  ;;  %2332 = vmatmul.mubr.f32.gmra.mrb[60].mxu0 %v2160_v2 }
 0x3cf   : > { %v2077_v51 = vpop.xlane.xlu0 %2076  ;;  %v2164_v3 = vmul.f32 %v3548_v54, %v4912_v37  ;;  %v2163_v61 = vmul.f32 %v3548_v54, %v4910_v26 }
 0x3d0   : > { %3553 = vrcp.f32 %v2077_v51 }
 0x3d1   : > { %2336 = vmatprep.mubr.f32.mxu0 %v2164_v3 }
 0x3d2   : > { %v3550_v11 = vpop.eup %3549  ;;  %2337 = vmatmul.mubr.f32.gmra.mrb[62].mxu0 %v2163_v61 }
 0x3d3   : > { %v2080_v7 = vpop.xlane.xlu1 %2079  ;;  %v2167_v5 = vmul.f32 %v3550_v11, %v4920_v43  ;;  %v2166_v55 = vmul.f32 %v3550_v11, %v4918_v19 }
 0x3d4   : > { %3555 = vrcp.f32 %v2080_v7 }
 0x3d5   : > { %2341 = vmatprep.mubr.f32.mxu0 %v2167_v5 }
 0x3d6   : > { %v3552_v40 = vpop.eup %3551  ;;  %2342 = vmatmul.mubr.f32.gmra.mrb[64].mxu0 %v2166_v55 }
 0x3d7   : > { %v2083_v16 = vpop.xlane.xlu0 %2082  ;;  %v2170_v48 = vmul.f32 %v3552_v40, %v4928_v27  ;;  %v2169_v37 = vmul.f32 %v3552_v40, %v4926_v17 }
 0x3d8   : > { %3557 = vrcp.f32 %v2083_v16 }
 0x3d9   : > { %2346 = vmatprep.mubr.f32.mxu0 %v2170_v48 }
 0x3da   : > { %v3554_v26 = vpop.eup %3553  ;;  %2347 = vmatmul.mubr.f32.gmra.mrb[66].mxu0 %v2169_v37 }
 0x3db   : > { %v2086_v33 = vpop.xlane.xlu1 %2085  ;;  %v2173_v44 = vmul.f32 %v3554_v26, %v4936_v39  ;;  %v2172_v43 = vmul.f32 %v3554_v26, %v4934_v23 }
 0x3dc   : > { %3559 = vrcp.f32 %v2086_v33  ;;  %v5533_v33 = vld [vmem:[#allocation20_spill] sm:$0xff] }
 0x3dd   : > { %2351 = vmatprep.mubr.f32.mxu0 %v2173_v44 }
 0x3de   : > { %v3556_v19 = vpop.eup %3555  ;;  %2352 = vmatmul.mubr.f32.gmra.mrb[68].mxu0 %v2172_v43  ;;  %v5534_v43 = vld [vmem:[#allocation17_spill] sm:$0xff] }
 0x3df   : > { %v2089_v28 = vpop.xlane.xlu0 %2088  ;;  %v2176_v34 = vmul.f32 %v3556_v19, %v4944_v62  ;;  %v2175_v27 = vmul.f32 %v3556_v19, %v4942_v20 }
 0x3e0   : > { %3561 = vrcp.f32 %v2089_v28  ;;  %v5535_v28 = vld [vmem:[#allocation24_spill] sm:$0xff] }
 0x3e1   : > { %2356 = vmatprep.mubr.f32.mxu0 %v2176_v34 }
 0x3e2   : > { %v3558_v17 = vpop.eup %3557  ;;  %2357 = vmatmul.mubr.f32.gmra.mrb[70].mxu0 %v2175_v27  ;;  %v5536_v27 = vld [vmem:[#allocation21_spill] sm:$0xff] }
 0x3e3   : > { %v2092_v50 = vpop.xlane.xlu1 %2091  ;;  %v2179_v35 = vmul.f32 %v3558_v17, %v4952_v57  ;;  %v2178_v39 = vmul.f32 %v3558_v17, %v4950_v41 }
 0x3e4   : > { %3563 = vrcp.f32 %v2092_v50  ;;  %v5537_v50 = vld [vmem:[#allocation28_spill] sm:$0xff] }
 0x3e5   : > { %2361 = vmatprep.mubr.f32.mxu0 %v2179_v35 }
 0x3e6   : > { %v3560_v23 = vpop.eup %3559  ;;  %2362 = vmatmul.mubr.f32.gmra.mrb[72].mxu0 %v2178_v39  ;;  %v5538_v39 = vld [vmem:[#allocation25_spill] sm:$0xff] }
 0x3e7   : > { %v2095_v12 = vpop.xlane.xlu0 %2094  ;;  %v2182_v49 = vmul.f32 %v3560_v23, %v4960_v29  ;;  %v2181_v62 = vmul.f32 %v3560_v23, %v4958_v47 }
 0x3e8   : > { %3565 = vrcp.f32 %v2095_v12 }
 0x3e9   : > { %2366 = vmatprep.mubr.f32.mxu0 %v2182_v49 }
 0x3ea   : > { %v3562_v20 = vpop.eup %3561  ;;  %2367 = vmatmul.mubr.f32.gmra.mrb[74].mxu0 %v2181_v62 }
 0x3eb   : > { %v2098_v53 = vpop.xlane.xlu1 %2097  ;;  %v2185_v58 = vmul.f32 %v3562_v20, %v4968_v31  ;;  %v2184_v57 = vmul.f32 %v3562_v20, %v4966_v52 }
 0x3ec   : > { %3567 = vrcp.f32 %v2098_v53 }
 0x3ed   : > { %2371 = vmatprep.mubr.f32.mxu0 %v2185_v58 }
 0x3ee   : > { %v3564_v41 = vpop.eup %3563  ;;  %2372 = vmatmul.mubr.f32.gmra.mrb[76].mxu0 %v2184_v57 }
 0x3ef   : > { %v2101_v36 = vpop.xlane.xlu0 %2100  ;;  %v2188_v45 = vmul.f32 %v3564_v41, %v4976_v10  ;;  %v2187_v29 = vmul.f32 %v3564_v41, %v4974_v59 }
 0x3f0   : > { %3569 = vrcp.f32 %v2101_v36 }
 0x3f1   : > { %2376 = vmatprep.mubr.f32.mxu0 %v2188_v45 }
 0x3f2   : > { %v3566_v47 = vpop.eup %3565  ;;  %2377 = vmatmul.mubr.f32.gmra.mrb[78].mxu0 %v2187_v29 }
 0x3f3   : > { %v2104_v13 = vpop.xlane.xlu1 %2103  ;;  %v2191_v2 = vmul.f32 %v3566_v47, %v4984_v14  ;;  %v2190_v31 = vmul.f32 %v3566_v47, %v4982_v0  ;;  %v5539_v47 = vld [vmem:[#allocation32_spill] sm:$0xff] }
 0x3f4   : > { %3571 = vrcp.f32 %v2104_v13 }
 0x3f5   : > { %2381 = vmatprep.mubr.f32.mxu0 %v2191_v2  ;;  %v5540_v2 = vld [vmem:[#allocation29_spill] sm:$0xff] }
 0x3f6   : > { %v3568_v52 = vpop.eup %3567  ;;  %2382 = vmatmul.mubr.f32.gmra.mrb[80].mxu0 %v2190_v31 }
 0x3f7   : > { %v2107_v54 = vpop.xlane.xlu0 %2106  ;;  %v2194_v51 = vmul.f32 %v3568_v52, %v4992_v21  ;;  %v2193_v10 = vmul.f32 %v3568_v52, %v4990_v8 }
 0x3f8   : > { %3573 = vrcp.f32 %v2107_v54  ;;  %v5542_v54 = vld [vmem:[#allocation34_spill] sm:$0xff] }
 0x3f9   : > { %2386 = vmatprep.mubr.f32.mxu0 %v2194_v51 }
 0x3fa   : > { %v3570_v59 = vpop.eup %3569  ;;  %2387 = vmatmul.mubr.f32.gmra.mrb[82].mxu0 %v2193_v10  ;;  %v5543_v10 = vld [vmem:[#allocation19_spill] sm:$0xff] }
 0x3fb   : > { %v2110_v3 = vpop.xlane.xlu1 %2109  ;;  %v2197_v61 = vmul.f32 %v3570_v59, %v5000_v18  ;;  %v2196_v14 = vmul.f32 %v3570_v59, %v4998_v15 }
 0x3fc   : > { %3575 = vrcp.f32 %v2110_v3  ;;  %v5166_v3 = vstv %s2462_s27 }
 0x3fd   : > { %2391 = vmatprep.mubr.f32.mxu0 %v2197_v61 }
 0x3fe   : > { %v3572_v0 = vpop.eup %3571  ;;  %2392 = vmatmul.mubr.f32.gmra.mrb[84].mxu0 %v2196_v14 }
 0x3ff   : > { %v2113_v11 = vpop.xlane.xlu0 %2112  ;;  %v2200_v7 = vmul.f32 %v3572_v0, %v5008_v24  ;;  %v2199_v21 = vmul.f32 %v3572_v0, %v5006_v1 }
 0x400   : > { %3577 = vrcp.f32 %v2113_v11  ;;  %v3597_v11 = vld [vmem:[%s3916_s28] sm:$0xff] }
 0x401   : > { %2396 = vmatprep.mubr.f32.mxu0 %v2200_v7 }
 0x402   : > { %v3574_v8 = vpop.eup %3573  ;;  %2397 = vmatmul.mubr.f32.gmra.mrb[86].mxu0 %v2199_v21 }
 0x403   : > { %v2116_v5 = vpop.xlane.xlu1 %2115  ;;  %v2203_v55 = vmul.f32 %v3574_v8, %v5016_v4  ;;  %v2202_v18 = vmul.f32 %v3574_v8, %v5014_v30 }
 0x404   : > { %3579 = vrcp.f32 %v2116_v5  ;;  %v3598_v5 = vld [vmem:[%s3916_s28 + $0x8] sm:$0xff] }
 0x405   : > { %2401 = vmatprep.mubr.f32.mxu0 %v2203_v55 }
 0x406   : > { %v3576_v15 = vpop.eup %3575  ;;  %2402 = vmatmul.mubr.f32.gmra.mrb[88].mxu0 %v2202_v18 }
 0x407   : > { %v2119_v40 = vpop.xlane.xlu0 %2118  ;;  %v2206_v16 = vmul.f32 %v3576_v15, %v5024_v56  ;;  %v2205_v24 = vmul.f32 %v3576_v15, %v5022_v32 }
 0x408   : > { %3581 = vrcp.f32 %v2119_v40 }
 0x409   : > { %2406 = vmatprep.mubr.f32.mxu0 %v2206_v16  ;;  %v3599_v16 = vld [vmem:[%s3916_s28 + $0x10] sm:$0xff] }
 0x40a   : > { %v3578_v1 = vpop.eup %3577  ;;  %2407 = vmatmul.mubr.f32.gmra.mrb[90].mxu0 %v2205_v24 }
 0x40b   : > { %v2122_v48 = vpop.xlane.xlu1 %2121  ;;  %v2209_v37 = vmul.f32 %v3578_v1, %v5032_v38  ;;  %v2208_v4 = vmul.f32 %v3578_v1, %v5030_v22 }
 0x40c   : > { %3583 = vrcp.f32 %v2122_v48 }
 0x40d   : > { %2411 = vmatprep.mubr.f32.mxu0 %v2209_v37 }
 0x40e   : > { %v3580_v30 = vpop.eup %3579  ;;  %2412 = vmatmul.mubr.f32.gmra.mrb[92].mxu0 %v2208_v4  ;;  %v3600_v4 = vld [vmem:[%s3916_s28 + $0x18] sm:$0xff] }
 0x40f   : > { %v2125_v26 = vpop.xlane.xlu0 %2124  ;;  %v2212_v44 = vmul.f32 %v3580_v30, %v5533_v33  ;;  %v2211_v56 = vmul.f32 %v3580_v30, %v5534_v43  ;;  %v3601_v43 = vld [vmem:[%s3916_s28 + $0x20] sm:$0xff] }
 0x410   : > { %3585 = vrcp.f32 %v2125_v26 }
 0x411   : > { %2416 = vmatprep.mubr.f32.mxu0 %v2212_v44 }
 0x412   : > { %v3582_v32 = vpop.eup %3581  ;;  %2417 = vmatmul.mubr.f32.gmra.mrb[94].mxu0 %v2211_v56 }
 0x413   : > { %v2128_v19 = vpop.xlane.xlu1 %2127  ;;  %v2215_v34 = vmul.f32 %v3582_v32, %v5535_v28  ;;  %v2214_v38 = vmul.f32 %v3582_v32, %v5536_v27 }
 0x414   : > { %3587 = vrcp.f32 %v2128_v19 }
 0x415   : > { %2421 = vmatprep.mubr.f32.mxu0 %v2215_v34  ;;  %v3602_v34 = vld [vmem:[%s3916_s28 + $0x28] sm:$0xff] }
 0x416   : > { %v3584_v22 = vpop.eup %3583  ;;  %2422 = vmatmul.mubr.f32.gmra.mrb[96].mxu0 %v2214_v38 }
 0x417   : > { %v2131_v17 = vpop.xlane.xlu0 %2130  ;;  %v2218_v35 = vmul.f32 %v3584_v22, %v5537_v50  ;;  %v2217_v23 = vmul.f32 %v3584_v22, %v5538_v39  ;;  %v3603_v50 = vld [vmem:[%s3916_s28 + $0x30] sm:$0xff] }
 0x418   : > { %3589 = vrcp.f32 %v2131_v17 }
 0x419   : > { %2426 = vmatprep.mubr.f32.mxu0 %v2218_v35 }
 0x41a   : > { %v3586_v12 = vpop.eup %3585  ;;  %2427 = vmatmul.mubr.f32.gmra.mrb[98].mxu0 %v2217_v23 }
 0x41b   : > { %v2134_v49 = vpop.xlane.xlu1 %2133  ;;  %v2221_v62 = vmul.f32 %v3586_v12, %v5064_v6  ;;  %v2220_v20 = vmul.f32 %v3586_v12, %v5062_v46 }
 0x41c   : > { %3591 = vrcp.f32 %v2134_v49  ;;  %v3604_v49 = vld [vmem:[%s3916_s28 + $0x38] sm:$0xff] }
 0x41d   : > { %2431 = vmatprep.mubr.f32.mxu0 %v2221_v62 }
 0x41e   : > { %v3588_v53 = vpop.eup %3587  ;;  %2432 = vmatmul.mubr.f32.gmra.mrb[100].mxu0 %v2220_v20 }
 0x41f   : > { %v2137_v58 = vpop.xlane.xlu0 %2136  ;;  %v2224_v57 = vmul.f32 %v3588_v53, %v5072_v9  ;;  %v2223_v41 = vmul.f32 %v3588_v53, %v5070_v63  ;;  %v5541_v63 = vld [vmem:[#allocation18_spill] sm:$0xff] }
 0x420   : > { %3593 = vrcp.f32 %v2137_v58 }
 0x421   : > { %2436 = vmatprep.mubr.f32.mxu0 %v2224_v57  ;;  %v3605_v57 = vld [vmem:[%s3916_s28 + $0x40] sm:$0xff] }
 0x422   : > { %v3590_v36 = vpop.eup %3589  ;;  %2437 = vmatmul.mubr.f32.gmra.mrb[102].mxu0 %v2223_v41 }
 0x423   : > { %v2140_v45 = vpop.xlane.xlu1 %2139  ;;  %v2227_v29 = vmul.f32 %v3590_v36, %v5080_v60  ;;  %v2226_v6 = vmul.f32 %v3590_v36, %v5078_v25 }
 0x424   : > { %3595 = vrcp.f32 %v2140_v45 }
 0x425   : > { %2441 = vmatprep.mubr.f32.mxu0 %v2227_v29 }
 0x426   : > { %v3592_v46 = vpop.eup %3591  ;;  %2442 = vmatmul.mubr.f32.gmra.mrb[104].mxu0 %v2226_v6  ;;  %v3606_v6 = vld [vmem:[%s3916_s28 + $0x48] sm:$0xff] }
 0x427   : > { %v2230_v13 = vmul.f32 %v3592_v46, %v5539_v47  ;;  %v2229_v31 = vmul.f32 %v3592_v46, %v5540_v2 }
 0x429   : > { %2446 = vmatprep.mubr.f32.mxu0 %v2230_v13 }
 0x42a   : > { %v3594_v9 = vpop.eup %3593  ;;  %2447 = vmatmul.mubr.f32.gmra.mrb[106].mxu0 %v2229_v31  ;;  %v3607_v31 = vld [vmem:[%s3916_s28 + $0x50] sm:$0xff] }
 0x42b   : > { %v2233_v52 = vmul.f32 %v3594_v9, %v5541_v63  ;;  %v2232_v51 = vmul.f32 %v3594_v9, %v5542_v54 }
 0x42d   : > { %2451 = vmatprep.mubr.f32.mxu0 %v2233_v52 }
 0x42e   : > { %v3596_v60 = vpop.eup %3595  ;;  %2452 = vmatmul.mubr.f32.gmra.mrb[108].mxu0 %v2232_v51  ;;  %v3608_v51 = vld [vmem:[%s3916_s28 + $0x58] sm:$0xff] }
 0x42f   : > { %v2236_v25 = vmul.f32 %v3596_v60, %v5098_v42  ;;  %v2235_v59 = vmul.f32 %v3596_v60, %v5543_v10 }
 0x431   : > { %2456 = vmatprep.mubr.f32.mxu0 %v2236_v25 }
 0x432   : > { %2457 = vmatmul.mubr.f32.gmra.mrb[110].mxu0 %v2235_v59 }
 0x489   : > { %v2303_v61 = vpop.f32.mrb[48].mxu0 }
 0x48a   : > { %v2464_v14 = vmul.f32 %v5166_v3, %v2303_v61  ;;  %v2305_v0 = vpop.f32.mrb[49].mxu0  ;;  %v3609_v61 = vld [vmem:[%s3916_s28 + $0x60] sm:$0xff] }
 0x48c   : > { %v2496_v7 = vadd.f32 %v3597_v11, %v2464_v14 }
 0x48d   : > { %v2308_v21 = vpop.f32.mrb[50].mxu0 }
 0x48e   : > { %2528 = vst.msk [vmem:[%s5172_s0] sm:$0xff] %vm417_vm0, %v2496_v7  ;;  %v2465_v42 = vmul.f32 %v5166_v3, %v2308_v21  ;;  %v2310_v8 = vpop.f32.mrb[51].mxu0  ;;  %v3610_v21 = vld [vmem:[%s3916_s28 + $0x68] sm:$0xff] }
 0x490   : > { %v2497_v55 = vadd.f32 %v3598_v5, %v2465_v42 }
 0x491   : > { %v2313_v18 = vpop.f32.mrb[52].mxu0 }
 0x492   : > { %2529 = vst.msk [vmem:[%s5172_s0 + $0x8] sm:$0xff] %vm417_vm0, %v2497_v55  ;;  %v2466_v15 = vmul.f32 %v5166_v3, %v2313_v18  ;;  %v2315_v40 = vpop.f32.mrb[53].mxu0  ;;  %v3611_v18 = vld [vmem:[%s3916_s28 + $0x70] sm:$0xff] }
 0x494   : > { %v2498_v24 = vadd.f32 %v3599_v16, %v2466_v15 }
 0x495   : > { %v2318_v1 = vpop.f32.mrb[54].mxu0 }
 0x496   : > { %2530 = vst.msk [vmem:[%s5172_s0 + $0x10] sm:$0xff] %vm417_vm0, %v2498_v24  ;;  %v2467_v48 = vmul.f32 %v5166_v3, %v2318_v1  ;;  %v2320_v37 = vpop.f32.mrb[55].mxu0  ;;  %v3612_v1 = vld [vmem:[%s3916_s28 + $0x78] sm:$0xff] }
 0x498   : > { %v2499_v30 = vadd.f32 %v3600_v4, %v2467_v48 }
 0x499   : > { %v2323_v26 = vpop.f32.mrb[56].mxu0 }
 0x49a   : > { %2531 = vst.msk [vmem:[%s5172_s0 + $0x18] sm:$0xff] %vm417_vm0, %v2499_v30  ;;  %v2468_v33 = vmul.f32 %v5166_v3, %v2323_v26  ;;  %v2325_v44 = vpop.f32.mrb[57].mxu0  ;;  %v3613_v26 = vld [vmem:[%s3916_s28 + $0x80] sm:$0xff] }
 0x49c   : > { %v2500_v56 = vadd.f32 %v3601_v43, %v2468_v33 }
 0x49d   : > { %v2328_v32 = vpop.f32.mrb[58].mxu0 }
 0x49e   : > { %2532 = vst.msk [vmem:[%s5172_s0 + $0x20] sm:$0xff] %vm417_vm0, %v2500_v56  ;;  %v2469_v19 = vmul.f32 %v5166_v3, %v2328_v32  ;;  %v2330_v28 = vpop.f32.mrb[59].mxu0  ;;  %v3614_v32 = vld [vmem:[%s3916_s28 + $0x88] sm:$0xff] }
 0x4a0   : > { %v2501_v27 = vadd.f32 %v3602_v34, %v2469_v19 }
 0x4a1   : > { %v2333_v38 = vpop.f32.mrb[60].mxu0 }
 0x4a2   : > { %2533 = vst.msk [vmem:[%s5172_s0 + $0x28] sm:$0xff] %vm417_vm0, %v2501_v27  ;;  %v2470_v22 = vmul.f32 %v5166_v3, %v2333_v38  ;;  %v2335_v17 = vpop.f32.mrb[61].mxu0  ;;  %v3615_v38 = vld [vmem:[%s3916_s28 + $0x90] sm:$0xff] }
 0x4a4   : > { %v2502_v35 = vadd.f32 %v3603_v50, %v2470_v22 }
 0x4a5   : > { %v2338_v39 = vpop.f32.mrb[62].mxu0 }
 0x4a6   : > { %2534 = vst.msk [vmem:[%s5172_s0 + $0x30] sm:$0xff] %vm417_vm0, %v2502_v35  ;;  %v2471_v23 = vmul.f32 %v5166_v3, %v2338_v39  ;;  %v2340_v12 = vpop.f32.mrb[63].mxu0  ;;  %v3616_v39 = vld [vmem:[%s3916_s28 + $0x98] sm:$0xff] }
 0x4a8   : > { %v2503_v62 = vadd.f32 %v3604_v49, %v2471_v23 }
 0x4a9   : > { %v2343_v20 = vpop.f32.mrb[64].mxu0 }
 0x4aa   : > { %2535 = vst.msk [vmem:[%s5172_s0 + $0x38] sm:$0xff] %vm417_vm0, %v2503_v62  ;;  %v2472_v53 = vmul.f32 %v5166_v3, %v2343_v20  ;;  %v2345_v58 = vpop.f32.mrb[65].mxu0  ;;  %v3617_v20 = vld [vmem:[%s3916_s28 + $0xa0] sm:$0xff] }
 0x4ac   : > { %v2504_v41 = vadd.f32 %v3605_v57, %v2472_v53 }
 0x4ad   : > { %v2348_v36 = vpop.f32.mrb[66].mxu0 }
 0x4ae   : > { %2536 = vst.msk [vmem:[%s5172_s0 + $0x40] sm:$0xff] %vm417_vm0, %v2504_v41  ;;  %v2473_v45 = vmul.f32 %v5166_v3, %v2348_v36  ;;  %v2350_v29 = vpop.f32.mrb[67].mxu0  ;;  %v3618_v36 = vld [vmem:[%s3916_s28 + $0xa8] sm:$0xff] }
 0x4b0   : > { %v2505_v46 = vadd.f32 %v3606_v6, %v2473_v45 }
 0x4b1   : > { %v2353_v47 = vpop.f32.mrb[68].mxu0 }
 0x4b2   : > { %2537 = vst.msk [vmem:[%s5172_s0 + $0x48] sm:$0xff] %vm417_vm0, %v2505_v46  ;;  %v2474_v13 = vmul.f32 %v5166_v3, %v2353_v47  ;;  %v2355_v2 = vpop.f32.mrb[69].mxu0  ;;  %v3619_v47 = vld [vmem:[%s3916_s28 + $0xb0] sm:$0xff] }
 0x4b4   : > { %v2506_v9 = vadd.f32 %v3607_v31, %v2474_v13 }
 0x4b5   : > { %v2358_v63 = vpop.f32.mrb[70].mxu0 }
 0x4b6   : > { %2538 = vst.msk [vmem:[%s5172_s0 + $0x50] sm:$0xff] %vm417_vm0, %v2506_v9  ;;  %v2475_v52 = vmul.f32 %v5166_v3, %v2358_v63  ;;  %v2360_v54 = vpop.f32.mrb[71].mxu0  ;;  %v3620_v63 = vld [vmem:[%s3916_s28 + $0xb8] sm:$0xff] }
 0x4b8   : > { %v2507_v60 = vadd.f32 %v3608_v51, %v2475_v52 }
 0x4b9   : > { %v2363_v25 = vpop.f32.mrb[72].mxu0 }
 0x4ba   : > { %2539 = vst.msk [vmem:[%s5172_s0 + $0x58] sm:$0xff] %vm417_vm0, %v2507_v60  ;;  %v2476_v10 = vmul.f32 %v5166_v3, %v2363_v25  ;;  %v2365_v59 = vpop.f32.mrb[73].mxu0  ;;  %v3621_v25 = vld [vmem:[%s3916_s28 + $0xc0] sm:$0xff] }
 0x4bc   : > { %v2508_v14 = vadd.f32 %v3609_v61, %v2476_v10 }
 0x4bd   : > { %v2368_v0 = vpop.f32.mrb[74].mxu0 }
 0x4be   : > { %2540 = vst.msk [vmem:[%s5172_s0 + $0x60] sm:$0xff] %vm417_vm0, %v2508_v14  ;;  %v2477_v11 = vmul.f32 %v5166_v3, %v2368_v0  ;;  %v2370_v7 = vpop.f32.mrb[75].mxu0  ;;  %v3622_v0 = vld [vmem:[%s3916_s28 + $0xc8] sm:$0xff] }
 0x4c0   : > { %v2509_v42 = vadd.f32 %v3610_v21, %v2477_v11 }
 0x4c1   : > { %v2373_v8 = vpop.f32.mrb[76].mxu0 }
 0x4c2   : > { %2541 = vst.msk [vmem:[%s5172_s0 + $0x68] sm:$0xff] %vm417_vm0, %v2509_v42  ;;  %v2478_v5 = vmul.f32 %v5166_v3, %v2373_v8  ;;  %v2375_v55 = vpop.f32.mrb[77].mxu0  ;;  %v3623_v8 = vld [vmem:[%s3916_s28 + $0xd0] sm:$0xff] }
 0x4c4   : > { %v2510_v15 = vadd.f32 %v3611_v18, %v2478_v5 }
 0x4c5   : > { %v2378_v40 = vpop.f32.mrb[78].mxu0 }
 0x4c6   : > { %2542 = vst.msk [vmem:[%s5172_s0 + $0x70] sm:$0xff] %vm417_vm0, %v2510_v15  ;;  %v2479_v16 = vmul.f32 %v5166_v3, %v2378_v40  ;;  %v2380_v24 = vpop.f32.mrb[79].mxu0  ;;  %v3624_v40 = vld [vmem:[%s3916_s28 + $0xd8] sm:$0xff] }
 0x4c8   : > { %v2511_v48 = vadd.f32 %v3612_v1, %v2479_v16 }
 0x4c9   : > { %v2383_v37 = vpop.f32.mrb[80].mxu0 }
 0x4ca   : > { %2543 = vst.msk [vmem:[%s5172_s0 + $0x78] sm:$0xff] %vm417_vm0, %v2511_v48  ;;  %v2480_v4 = vmul.f32 %v5166_v3, %v2383_v37  ;;  %v2385_v30 = vpop.f32.mrb[81].mxu0  ;;  %v3625_v37 = vld [vmem:[%s3916_s28 + $0xe0] sm:$0xff] }
 0x4cc   : > { %v2512_v33 = vadd.f32 %v3613_v26, %v2480_v4 }
 0x4cd   : > { %v2388_v44 = vpop.f32.mrb[82].mxu0 }
 0x4ce   : > { %2544 = vst.msk [vmem:[%s5172_s0 + $0x80] sm:$0xff] %vm417_vm0, %v2512_v33  ;;  %v2481_v43 = vmul.f32 %v5166_v3, %v2388_v44  ;;  %v2390_v56 = vpop.f32.mrb[83].mxu0  ;;  %v3626_v44 = vld [vmem:[%s3916_s28 + $0xe8] sm:$0xff] }
 0x4d0   : > { %v2513_v19 = vadd.f32 %v3614_v32, %v2481_v43 }
 0x4d1   : > { %v2393_v28 = vpop.f32.mrb[84].mxu0 }
 0x4d2   : > { %2545 = vst.msk [vmem:[%s5172_s0 + $0x88] sm:$0xff] %vm417_vm0, %v2513_v19  ;;  %v2482_v34 = vmul.f32 %v5166_v3, %v2393_v28  ;;  %v2395_v27 = vpop.f32.mrb[85].mxu0  ;;  %v3627_v28 = vld [vmem:[%s3916_s28 + $0xf0] sm:$0xff] }
 0x4d4   : > { %v2514_v22 = vadd.f32 %v3615_v38, %v2482_v34 }
 0x4d5   : > { %v2398_v17 = vpop.f32.mrb[86].mxu0 }
 0x4d6   : > { %2546 = vst.msk [vmem:[%s5172_s0 + $0x90] sm:$0xff] %vm417_vm0, %v2514_v22  ;;  %v2483_v50 = vmul.f32 %v5166_v3, %v2398_v17  ;;  %v2400_v35 = vpop.f32.mrb[87].mxu0  ;;  %v3628_v17 = vld [vmem:[%s3916_s28 + $0xf8] sm:$0xff] }
 0x4d8   : > { %v2515_v23 = vadd.f32 %v3616_v39, %v2483_v50 }
 0x4d9   : > { %v2403_v12 = vpop.f32.mrb[88].mxu0 }
 0x4da   : > { %2547 = vst.msk [vmem:[%s5172_s0 + $0x98] sm:$0xff] %vm417_vm0, %v2515_v23  ;;  %v2484_v49 = vmul.f32 %v5166_v3, %v2403_v12  ;;  %v2405_v62 = vpop.f32.mrb[89].mxu0 }
 0x4dc   : > { %v2516_v53 = vadd.f32 %v3617_v20, %v2484_v49 }
 0x4dd   : > { %v2408_v58 = vpop.f32.mrb[90].mxu0 }
 0x4de   : > { %2548 = vst.msk [vmem:[%s5172_s0 + $0xa0] sm:$0xff] %vm417_vm0, %v2516_v53  ;;  %v2485_v57 = vmul.f32 %v5166_v3, %v2408_v58  ;;  %v2410_v41 = vpop.f32.mrb[91].mxu0 }
 0x4e0   : > { %v2517_v45 = vadd.f32 %v3618_v36, %v2485_v57 }
 0x4e1   : > { %v2413_v29 = vpop.f32.mrb[92].mxu0 }
 0x4e2   : > { %2549 = vst.msk [vmem:[%s5172_s0 + $0xa8] sm:$0xff] %vm417_vm0, %v2517_v45  ;;  %v2486_v6 = vmul.f32 %v5166_v3, %v2413_v29  ;;  %v2415_v46 = vpop.f32.mrb[93].mxu0 }
 0x4e4   : > { %v2518_v13 = vadd.f32 %v3619_v47, %v2486_v6 }
 0x4e5   : > { %v2418_v2 = vpop.f32.mrb[94].mxu0 }
 0x4e6   : > { %2550 = vst.msk [vmem:[%s5172_s0 + $0xb0] sm:$0xff] %vm417_vm0, %v2518_v13  ;;  %v2487_v31 = vmul.f32 %v5166_v3, %v2418_v2  ;;  %v2420_v9 = vpop.f32.mrb[95].mxu0 }
 0x4e8   : > { %v2519_v52 = vadd.f32 %v3620_v63, %v2487_v31 }
 0x4e9   : > { %v2423_v54 = vpop.f32.mrb[96].mxu0 }
 0x4ea   : > { %2551 = vst.msk [vmem:[%s5172_s0 + $0xb8] sm:$0xff] %vm417_vm0, %v2519_v52  ;;  %v2488_v51 = vmul.f32 %v5166_v3, %v2423_v54  ;;  %v2425_v60 = vpop.f32.mrb[97].mxu0 }
 0x4ec   : > { %v2520_v10 = vadd.f32 %v3621_v25, %v2488_v51 }
 0x4ed   : > { %v2428_v59 = vpop.f32.mrb[98].mxu0 }
 0x4ee   : > { %2552 = vst.msk [vmem:[%s5172_s0 + $0xc0] sm:$0xff] %vm417_vm0, %v2520_v10  ;;  %v2489_v61 = vmul.f32 %v5166_v3, %v2428_v59  ;;  %v2430_v14 = vpop.f32.mrb[99].mxu0 }
 0x4f0   : > { %v2521_v11 = vadd.f32 %v3622_v0, %v2489_v61 }
 0x4f1   : > { %v2433_v7 = vpop.f32.mrb[100].mxu0 }
 0x4f2   : > { %2553 = vst.msk [vmem:[%s5172_s0 + $0xc8] sm:$0xff] %vm417_vm0, %v2521_v11  ;;  %v2490_v21 = vmul.f32 %v5166_v3, %v2433_v7  ;;  %v2435_v42 = vpop.f32.mrb[101].mxu0 }
 0x4f4   : > { %v2522_v5 = vadd.f32 %v3623_v8, %v2490_v21 }
 0x4f5   : > { %v2438_v55 = vpop.f32.mrb[102].mxu0 }
 0x4f6   : > { %2554 = vst.msk [vmem:[%s5172_s0 + $0xd0] sm:$0xff] %vm417_vm0, %v2522_v5  ;;  %v2491_v18 = vmul.f32 %v5166_v3, %v2438_v55  ;;  %v2440_v15 = vpop.f32.mrb[103].mxu0 }
 0x4f8   : > { %v2523_v16 = vadd.f32 %v3624_v40, %v2491_v18 }
 0x4f9   : > { %v2443_v24 = vpop.f32.mrb[104].mxu0 }
 0x4fa   : > { %2555 = vst.msk [vmem:[%s5172_s0 + $0xd8] sm:$0xff] %vm417_vm0, %v2523_v16  ;;  %v2492_v1 = vmul.f32 %v5166_v3, %v2443_v24  ;;  %v2445_v48 = vpop.f32.mrb[105].mxu0 }
 0x4fc   : > { %v2524_v4 = vadd.f32 %v3625_v37, %v2492_v1 }
 0x4fd   : > { %v2448_v30 = vpop.f32.mrb[106].mxu0 }
 0x4fe   : > { %2556 = vst.msk [vmem:[%s5172_s0 + $0xe0] sm:$0xff] %vm417_vm0, %v2524_v4  ;;  %v2493_v26 = vmul.f32 %v5166_v3, %v2448_v30  ;;  %v2450_v33 = vpop.f32.mrb[107].mxu0 }
 0x500   : > { %v2525_v43 = vadd.f32 %v3626_v44, %v2493_v26 }
 0x501   : > { %v2453_v56 = vpop.f32.mrb[108].mxu0 }
 0x502   : > { %2557 = vst.msk [vmem:[%s5172_s0 + $0xe8] sm:$0xff] %vm417_vm0, %v2525_v43  ;;  %v2494_v32 = vmul.f32 %v5166_v3, %v2453_v56  ;;  %v2455_v19 = vpop.f32.mrb[109].mxu0 }
 0x504   : > { %v2526_v34 = vadd.f32 %v3627_v28, %v2494_v32 }
 0x505   : > { %v2458_v27 = vpop.f32.mrb[110].mxu0 }
 0x506   : > { %2558 = vst.msk [vmem:[%s5172_s0 + $0xf0] sm:$0xff] %vm417_vm0, %v2526_v34  ;;  %v2495_v38 = vmul.f32 %v5166_v3, %v2458_v27  ;;  %v2460_v22 = vpop.f32.mrb[111].mxu0 }
 0x508   : > { %v2527_v50 = vadd.f32 %v3628_v17, %v2495_v38 }
 0x50a   : > { %2559 = vst.msk [vmem:[%s5172_s0 + $0xf8] sm:$0xff] %vm417_vm0, %v2527_v50 }
 0x50b   : > { %3672 = shalt.err (!%p3669_p5)
}
 0x50c   : > { %s3673_s28 = scalar_lea.hbm %s5302_s24, 4096  ;;  %s3677_s26 = scalar_lea.hbm %s5364_s8, 8192 }
 0x50d   : > { %p3674_p4 = scmp.ne.s32.totalorder %s5302_s24, %s3673_s28  ;;  %p3678_p12 = scmp.lt.u32.totalorder %s5302_s24, %s5364_s8 }
 0x50e   : > { %p3679_p1 = scmp.lt.u32.totalorder %s3677_s26, %s3673_s28  ;;  %p3681_p8 = scmp.lt.u32.totalorder %s3673_s28, %s5302_s24 }
 0x50f   : > { %p3675_p7 = pnand %p3674_p4, %p5544_p9 }
 0x510   : > { %p3680_p3 = por %p3679_p1, %p3678_p12 }
 0x511   : > { %p3676_p10 = pneg %p3675_p7 }
 0x512   : > { %p3682_p11 = por %p3681_p8, %p3680_p3 }
 0x514   : > { %p3683_p0 = pnand %p3682_p11, %p3676_p10 }
 0x516   : > { %3686 = shalt.err (!%p3683_p0)
}
 0x517   : > { %s3748_s17 = smov 128   ;;  %s3749_s16 = smov 8  }
 0x518   : > { %3340 = dma.vmem_to_hbm [thread:$0]  (%p5544_p9), %s5304_s13, 4096, %s5302_s24, %s2561_s10, %s3748_s17, %s3748_s17, %s3749_s16  }
 0x519 PF: > { %s2591_s18 = sand.u32 1, %s3721_s29   ;;  %p5545_p6 = scmp.ne.s32.totalorder %s5424_s21, 0 }
 0x51a   : > { %p5546_p13 = scmp.ge.s32.totalorder %s3741_s12, 2  ;;  %s2592_s22 = scalar_lea.sflag [#allocation5], %s2591_s18 }
 0x51c   : > { %p3347_p2 = pnand %p5546_p13, %p5545_p6 }
 0x51e   : > { %3716 = dma.done.wait (!%p3347_p2), %s2592_s22, 4096  }
 0x51f   : > { %3718 = vsyncadd (!%p3347_p2), %s2592_s22, 4294963200  ;;  %s25_s12 = sadd.s32 1, %s3741_s12   ;;  %s5547_s29 = smov %s3725_s30 }
 0x520   : > { %p22_p5 = scmp.ge.s32.totalorder %s25_s12, 4   ;;  %s5548_s30 = smov %s3729_s9 }
 0x521   : > { %s5549_s9 = smov %s3854_s20  ;;  %s5550_s10 = smov %s3737_s11 }
 0x522   : > { %s5551_s11 = smov %s5553_s14  ;;  %24 = sbr.rel (!%p22_p5) target bundleno = 8 (0x8), region = 98 }
 0x529   :  { %2597 = vsyncpa [#allocation4], 1 }
 0x52a   :  { %2599 = vsyncpa [#allocation4 + $0x1], 1 }
 0x52b   :  { %2600 = vsyncpa [#allocation5], 1 }
 0x52c   :  { %2602 = vsyncpa [#allocation5 + $0x1], 1 }

</bundles_post_ra>
